<compile_context>
chip_gen: v7x
topology: tpu7x:2x2x1
jax: 0.10.0
libtpu: 0.0.40
codegen_flags: <defaults>
</compile_context>

<pallas_src>
import functools

import jax
import jax.numpy as jnp
from jax.experimental import pallas as pl
from jax.experimental.pallas import tpu as pltpu


def _round_up(x, m):
    return ((x + m - 1) // m) * m


def _conv_out(n, k, s):
    return (n - k) // s + 1


def _choose_tile_m(m, cap=512):
    """Row tile for the conv GEMMs.

    Small M -> a single block (no per-grid-step overhead; right call on the
    single-TC v5e/v6e).  Large M -> an even number of near-equal, 8-aligned
    blocks so v7x's two TensorCores split the work evenly.
    """
    if m <= cap:
        return m
    nblk = -(-m // cap)
    if nblk % 2:
        nblk += 1
    return _round_up(-(-m // nblk), 8)


# ----------------------------------------------------------------------------
# Pallas kernel 1: conv-as-GEMM + BN + ReLU   (used for conv1..conv3)
#   out = relu((patches @ w) * scale + shift), f32 accumulate, bf16 store.
# ----------------------------------------------------------------------------
def _gemm_bn_relu_kernel(x_ref, w_ref, s_ref, b_ref, o_ref):
    acc = jnp.dot(x_ref[...], w_ref[...], preferred_element_type=jnp.float32)
    acc = jnp.maximum(acc * s_ref[...] + b_ref[...], 0.0)
    o_ref[...] = acc.astype(o_ref.dtype)


def _gemm_bn_relu(patches, w, scale, shift):
    """patches: (M, Kp) bf16; w: (Kp, Cout) bf16; scale/shift: (1, Cout) f32.

    Returns (M, Cout) bf16.  Cout is NOT padded: the (tile_m, Cout) output
    block spans the full row width, so HBM writes stay contiguous and there
    is no 128-lane write amplification for the 8/16/32-channel layers.
    """
    M, Kp = patches.shape
    Kp2, Cout = w.shape
    assert Kp == Kp2
    tile_m = _choose_tile_m(M)
    grid = (pl.cdiv(M, tile_m),)
    return pl.pallas_call(
        _gemm_bn_relu_kernel,
        out_shape=jax.ShapeDtypeStruct((M, Cout), jnp.bfloat16),
        grid=grid,
        in_specs=[
            pl.BlockSpec((tile_m, Kp), lambda i: (i, 0)),
            pl.BlockSpec((Kp, Cout), lambda i: (0, 0)),
            pl.BlockSpec((1, Cout), lambda i: (0, 0)),
            pl.BlockSpec((1, Cout), lambda i: (0, 0)),
        ],
        out_specs=pl.BlockSpec((tile_m, Cout), lambda i: (i, 0)),
        compiler_params=pltpu.CompilerParams(
            dimension_semantics=("parallel",)),
    )(patches, w, scale, shift)


# ----------------------------------------------------------------------------
# Pallas kernel 2: fused tail = conv4 (in-kernel im2col) + BN + ReLU
#                               + flatten + fc1 + ReLU + fc2
# ----------------------------------------------------------------------------
def _tail_kernel(a3_ref, w4_ref, s4_ref, b4_ref, w1_ref, b1_ref, w2_ref,
                 b2_ref, o_ref, *, kh, kw, stride, ho4, wo4):
    # a3_ref: (H3, W3, nb, C3) bf16  -> window reads are leading-dim int
    #                                    indexing only (safe in Mosaic).
    # w4_ref: (kh*kw, C3, C4) bf16; s4/b4: (1, C4) f32
    # w1_ref: (ho4*wo4, C4, F) bf16; b1: (1, F) f32
    # w2_ref: (F, E) bf16;           b2: (1, E) f32
    nb = a3_ref.shape[2]
    c4 = w4_ref.shape[2]
    fdim = w1_ref.shape[2]
    s4 = s4_ref[...]
    b4 = b4_ref[...]
    h = jnp.zeros((nb, fdim), jnp.float32)
    for s_idx in range(ho4 * wo4):          # static unroll over conv4 output
        ho, wo = s_idx // wo4, s_idx % wo4
        a4 = jnp.zeros((nb, c4), jnp.float32)
        for w_idx in range(kh * kw):        # static unroll over the window
            i, j = w_idx // kw, w_idx % kw
            a4 = a4 + jnp.dot(a3_ref[stride * ho + i, stride * wo + j],
                              w4_ref[w_idx],
                              preferred_element_type=jnp.float32)
        a4 = jnp.maximum(a4 * s4 + b4, 0.0)                 # conv4 BN + ReLU
        h = h + jnp.dot(a4.astype(jnp.bfloat16), w1_ref[s_idx],
                        preferred_element_type=jnp.float32)  # fc1 partial sum
    h = jnp.maximum(h + b1_ref[...], 0.0)                    # ReLU(fc1)
    out = jnp.dot(h.astype(jnp.bfloat16), w2_ref[...],
                  preferred_element_type=jnp.float32)        # fc2
    o_ref[...] = out + b2_ref[...]


def tail_conv4_fc(a3_hwnc, tail, *, kh, kw, stride, ho4, wo4,
                  frames_per_block=128):
    """a3_hwnc: (H3, W3, N, C3) bf16.  Returns (N, embed) f32."""
    H3, W3, NB, C3 = a3_hwnc.shape
    E = tail["b2"].shape[1]
    nbt = NB if NB <= frames_per_block else frames_per_block
    grid = (pl.cdiv(NB, nbt),)
    kern = functools.partial(_tail_kernel, kh=kh, kw=kw, stride=stride,
                             ho4=ho4, wo4=wo4)
    return pl.pallas_call(
        kern,
        out_shape=jax.ShapeDtypeStruct((NB, E), jnp.float32),
        grid=grid,
        in_specs=[
            pl.BlockSpec((H3, W3, nbt, C3), lambda i: (0, 0, i, 0)),
            pl.BlockSpec(tail["w4"].shape, lambda i: (0, 0, 0)),
            pl.BlockSpec(tail["s4"].shape, lambda i: (0, 0)),
            pl.BlockSpec(tail["b4"].shape, lambda i: (0, 0)),
            pl.BlockSpec(tail["w1"].shape, lambda i: (0, 0, 0)),
            pl.BlockSpec(tail["b1"].shape, lambda i: (0, 0)),
            pl.BlockSpec(tail["w2"].shape, lambda i: (0, 0)),
            pl.BlockSpec(tail["b2"].shape, lambda i: (0, 0)),
        ],
        out_specs=pl.BlockSpec((nbt, E), lambda i: (i, 0)),
        compiler_params=pltpu.CompilerParams(
            dimension_semantics=("parallel",)),
    )(a3_hwnc, tail["w4"], tail["s4"], tail["b4"],
      tail["w1"], tail["b1"], tail["w2"], tail["b2"])


# ----------------------------------------------------------------------------
# XLA-side im2col for conv1..conv3 (K padding folded into the concatenate)
# ----------------------------------------------------------------------------
def _im2col(x, kh, kw, stride, k_pad):
    """x: (N, H, W, C) NHWC -> ((N*Ho*Wo, k_pad) patches, Ho, Wo)."""
    N, H, W, C = x.shape
    Ho = _conv_out(H, kh, stride)
    Wo = _conv_out(W, kw, stride)
    cols = []
    for i in range(kh):
        for j in range(kw):
            cols.append(x[:, i:i + stride * (Ho - 1) + 1:stride,
                          j:j + stride * (Wo - 1) + 1:stride, :])
    k = kh * kw * C
    assert k_pad >= k
    if k_pad > k:
        cols.append(jnp.zeros((N, Ho, Wo, k_pad - k), x.dtype))
    p = jnp.concatenate(cols, axis=3)           # (N, Ho, Wo, k_pad)
    return p.reshape(N * Ho * Wo, k_pad), Ho, Wo


# ----------------------------------------------------------------------------
# One-time parameter preprocessing (hoisted out of the forward path)
# ----------------------------------------------------------------------------
def pack_params(params, img_h, img_w, eps=1e-5):
    ks = (5, 3, 3, 3)
    st = (2, 2, 2, 2)
    shapes = []
    h, w = img_h, img_w
    for li in range(4):
        h, w = _conv_out(h, ks[li], st[li]), _conv_out(w, ks[li], st[li])
        shapes.append((h, w))
    cfg = {"k1": ks[0], "k2": ks[1], "k3": ks[2], "k4": ks[3],
           "s1": st[0], "s2": st[1], "s3": st[2], "s4": st[3],
           "ho4": shapes[3][0], "wo4": shapes[3][1]}

    packed = {}
    # conv1..conv3: (kh*kw*Cin -> Kp, Cout) weight in (i, j, ci) row order,
    # BN(eval) + conv bias folded into a single scale/shift.
    for li in (1, 2, 3):
        w_t, b, gamma, beta, mean, var = params[f"conv{li}"]
        cout, cin, kh, kw = w_t.shape
        k = kh * kw * cin
        kp = _round_up(k, 16)                       # bf16 sublane packing
        wm = jnp.transpose(w_t, (2, 3, 1, 0)).reshape(k, cout)
        wm = jnp.pad(wm, ((0, kp - k), (0, 0)))
        inv = 1.0 / jnp.sqrt(var + eps)
        scale = gamma * inv
        shift = beta + scale * (b - mean)
        packed[f"conv{li}"] = {
            "w": wm.astype(jnp.bfloat16),
            "scale": scale.reshape(1, cout).astype(jnp.float32),
            "shift": shift.reshape(1, cout).astype(jnp.float32),
        }

    # Fused tail: conv4 (per-window-element weights), fc1 (per conv4 spatial
    # position, permuted from PyTorch's NCHW flatten order), fc2.
    w4, b4, g4, be4, m4, v4 = params["conv4"]
    c4, c3, kh4, kw4 = w4.shape
    inv = 1.0 / jnp.sqrt(v4 + eps)
    scale4 = g4 * inv
    shift4 = be4 + scale4 * (b4 - m4)
    w4m = jnp.transpose(w4, (2, 3, 1, 0)).reshape(kh4 * kw4, c3, c4)
    ho4, wo4 = shapes[3]
    fdim = params["fc1_w"].shape[0]
    w1 = params["fc1_w"].reshape(fdim, c4, ho4, wo4)
    w1 = jnp.transpose(w1, (2, 3, 1, 0)).reshape(ho4 * wo4, c4, fdim)
    packed["tail"] = {
        "w4": w4m.astype(jnp.bfloat16),
        "s4": scale4.reshape(1, c4).astype(jnp.float32),
        "b4": shift4.reshape(1, c4).astype(jnp.float32),
        "w1": w1.astype(jnp.bfloat16),
        "b1": params["fc1_b"].reshape(1, fdim).astype(jnp.float32),
        "w2": params["fc2_w"].T.astype(jnp.bfloat16),
        "b2": params["fc2_b"].reshape(1, -1).astype(jnp.float32),
    }
    return packed, cfg


# ----------------------------------------------------------------------------
# EncoderCNN forward (cfg is static via closure; jit over packed params + x)
# ----------------------------------------------------------------------------
def make_forward(cfg):
    def forward(packed, x_3d):
        B, T, C, H, W = x_3d.shape
        # Single layout change at the top: NCHW -> NHWC, bf16.
        x = (x_3d.reshape(B * T, C, H, W)
             .transpose(0, 2, 3, 1).astype(jnp.bfloat16))
        for li in (1, 2, 3):
            lay = packed[f"conv{li}"]
            patches, Ho, Wo = _im2col(x, cfg[f"k{li}"], cfg[f"k{li}"],
                                      cfg[f"s{li}"], lay["w"].shape[0])
            y = _gemm_bn_relu(patches, lay["w"], lay["scale"], lay["shift"])
            x = y.reshape(B * T, Ho, Wo, lay["w"].shape[1])
        # conv3 output -> (H3, W3, N, C3) so the fused tail kernel gathers
        # conv4 windows with leading-dim integer indexing only.
        a3 = jnp.transpose(x, (1, 2, 0, 3))
        out = tail_conv4_fc(a3, packed["tail"], kh=cfg["k4"], kw=cfg["k4"],
                            stride=cfg["s4"], ho4=cfg["ho4"], wo4=cfg["wo4"])
        # (B*T, E) rows are (b, t)-ordered -> matches torch's stack+transpose.
        return out.reshape(B, T, -1)

    return forward


# ----------------------------------------------------------------------------
# Deterministic parameter construction (PyTorch layouts)
# ----------------------------------------------------------------------------
def make_params(key, img_h, img_w, fc_hidden, embed_dim):
    ch = (3, 8, 16, 32, 64)
    ks = ((5, 5), (3, 3), (3, 3), (3, 3))
    st = ((2, 2), (2, 2), (2, 2), (2, 2))

    shape = (img_h, img_w)
    for i in range(4):
        shape = (_conv_out(shape[0], ks[i][0], st[i][0]),
                 _conv_out(shape[1], ks[i][1], st[i][1]))
    flat = ch[4] * shape[0] * shape[1]

    params = {}
    keys = jax.random.split(key, 17)
    k_i = 0
    for li in range(4):
        cin, cout = ch[li], ch[li + 1]
        kh, kw = ks[li]
        fan_in = cin * kh * kw
        w = jax.random.normal(keys[k_i], (cout, cin, kh, kw), jnp.float32)
        w = w * (1.0 / jnp.sqrt(fan_in)); k_i += 1
        b = 0.01 * jax.random.normal(keys[k_i], (cout,), jnp.float32); k_i += 1
        gamma = 1.0 + 0.1 * jax.random.normal(keys[k_i], (cout,), jnp.float32); k_i += 1
        beta = 0.1 * jax.random.normal(keys[k_i], (cout,), jnp.float32); k_i += 1
        run_mean = jnp.zeros((cout,), jnp.float32)   # PyTorch BN default init
        run_var = jnp.ones((cout,), jnp.float32)
        params[f"conv{li + 1}"] = (w, b, gamma, beta, run_mean, run_var)

    kf = jax.random.split(keys[-1], 4)
    params["fc1_w"] = (jax.random.normal(kf[0], (fc_hidden, flat), jnp.float32)
                       / jnp.sqrt(flat))
    params["fc1_b"] = 0.01 * jax.random.normal(kf[1], (fc_hidden,), jnp.float32)
    params["fc2_w"] = (jax.random.normal(kf[2], (embed_dim, fc_hidden), jnp.float32)
                       / jnp.sqrt(fc_hidden))
    params["fc2_b"] = 0.01 * jax.random.normal(kf[3], (embed_dim,), jnp.float32)
    return params


# ----------------------------------------------------------------------------
if __name__ == "__main__":
    B, T = 2, 4
    IMG_H = IMG_W = 33          # conv outs: 15 -> 7 -> 3 -> 1 (valid, stride 2)
    FC_HIDDEN, EMBED = 32, 16   # small stand-ins for fc_hidden=512, embed=300

    root = jax.random.PRNGKey(0)
    k_param, k_x = jax.random.split(root)
    params = make_params(k_param, IMG_H, IMG_W, FC_HIDDEN, EMBED)
    packed, cfg = pack_params(params, IMG_H, IMG_W)     # one-time packing
    x_3d = jax.random.normal(k_x, (B, T, 3, IMG_H, IMG_W), jnp.float32)

    forward = jax.jit(make_forward(cfg))
    out = jax.block_until_ready(forward(packed, x_3d))

    assert out.shape == (B, T, EMBED), out.shape
    assert out.dtype == jnp.float32
    assert bool(jnp.all(jnp.isfinite(out)))
    print("KERNEL_OK")
</pallas_src>

<mosaic_0001>
module attributes {stable_mosaic.version = 11 : i64} {
  func.func @_gemm_bn_relu_kernel(%arg0: i32, %arg1: memref<456x80xbf16, #tpu.memory_space<vmem>>, %arg2: memref<80x8xbf16, #tpu.memory_space<vmem>>, %arg3: memref<1x8xf32, #tpu.memory_space<vmem>>, %arg4: memref<1x8xf32, #tpu.memory_space<vmem>>, %arg5: memref<456x8xbf16, #tpu.memory_space<vmem>>) attributes {dimension_semantics = [#tpu.dimension_semantics<parallel>], iteration_bounds = array<i64: 4>, scalar_prefetch = 0 : i64, scratch_operands = 0 : i64, tpu.core_type = #tpu.core_type<tc>, window_params = [{transform_indices = @transform_0, window_bounds = array<i64: 456, 80>}, {pipeline_mode = #tpu.pipeline_mode<synchronous>, transform_indices = @transform_1, window_bounds = array<i64: 80, 8>}, {pipeline_mode = #tpu.pipeline_mode<synchronous>, transform_indices = @transform_2, window_bounds = array<i64: 1, 8>}, {pipeline_mode = #tpu.pipeline_mode<synchronous>, transform_indices = @transform_3, window_bounds = array<i64: 1, 8>}, {transform_indices = @transform_4, window_bounds = array<i64: 456, 8>}]} {
    %c0 = arith.constant 0 : index
    %c0_0 = arith.constant 0 : index
    %0 = vector.load %arg1[%c0, %c0_0] : memref<456x80xbf16, #tpu.memory_space<vmem>>, vector<456x80xbf16>
    %c0_1 = arith.constant 0 : index
    %c0_2 = arith.constant 0 : index
    %1 = vector.load %arg2[%c0_1, %c0_2] : memref<80x8xbf16, #tpu.memory_space<vmem>>, vector<80x8xbf16>
    %cst = arith.constant dense<0.000000e+00> : vector<456x8xf32>
    %2 = tpu.matmul %0, %1, %cst {dimension_numbers = #tpu.dot_dimension_numbers<[1], [0], [0], [1], [0, 0, 1, 1], [], []>} : vector<456x80xbf16>, vector<80x8xbf16>, vector<456x8xf32> -> vector<456x8xf32>
    %c0_3 = arith.constant 0 : index
    %c0_4 = arith.constant 0 : index
    %3 = vector.load %arg3[%c0_3, %c0_4] : memref<1x8xf32, #tpu.memory_space<vmem>>, vector<1x8xf32>
    %4 = vector.broadcast %3 : vector<1x8xf32> to vector<456x8xf32>
    %5 = arith.mulf %2, %4 : vector<456x8xf32>
    %c0_5 = arith.constant 0 : index
    %c0_6 = arith.constant 0 : index
    %6 = vector.load %arg4[%c0_5, %c0_6] : memref<1x8xf32, #tpu.memory_space<vmem>>, vector<1x8xf32>
    %7 = vector.broadcast %6 : vector<1x8xf32> to vector<456x8xf32>
    %8 = arith.addf %5, %7 : vector<456x8xf32>
    %cst_7 = arith.constant 0.000000e+00 : f32
    %9 = vector.broadcast %cst_7 : f32 to vector<456x8xf32>
    %10 = arith.maximumf %8, %9 : vector<456x8xf32>
    %11 = arith.truncf %10 : vector<456x8xf32> to vector<456x8xbf16>
    %c0_8 = arith.constant 0 : index
    %c0_9 = arith.constant 0 : index
    %12 = vector.load %arg5[%c0_8, %c0_9] : memref<456x8xbf16, #tpu.memory_space<vmem>>, vector<456x8xbf16>
    tpu.vector_store %arg5[%c0_8, %c0_9], %11 {strides = array<i32>} : memref<456x8xbf16, #tpu.memory_space<vmem>>, vector<456x8xbf16>,
    return
  }
  func.func @transform_0(%arg0: i32) -> (i32, i32) {
    %c0_i32 = arith.constant 0 : i32
    %c0_i32_0 = arith.constant 0 : i32
    return %arg0, %c0_i32 : i32, i32
  }
  func.func @transform_1(%arg0: i32) -> (i32, i32) {
    %c0_i32 = arith.constant 0 : i32
    %c0_i32_0 = arith.constant 0 : i32
    %c0_i32_1 = arith.constant 0 : i32
    return %c0_i32, %c0_i32_0 : i32, i32
  }
  func.func @transform_2(%arg0: i32) -> (i32, i32) {
    %c0_i32 = arith.constant 0 : i32
    %c0_i32_0 = arith.constant 0 : i32
    %c0_i32_1 = arith.constant 0 : i32
    return %c0_i32, %c0_i32_0 : i32, i32
  }
  func.func @transform_3(%arg0: i32) -> (i32, i32) {
    %c0_i32 = arith.constant 0 : i32
    %c0_i32_0 = arith.constant 0 : i32
    %c0_i32_1 = arith.constant 0 : i32
    return %c0_i32, %c0_i32_0 : i32, i32
  }
  func.func @transform_4(%arg0: i32) -> (i32, i32) {
    %c0_i32 = arith.constant 0 : i32
    %c0_i32_0 = arith.constant 0 : i32
    return %arg0, %c0_i32 : i32, i32
  }
}

module attributes {stable_mosaic.version = 11 : i64} {
  func.func @_gemm_bn_relu_kernel(%arg0: i32, %arg1: memref<392x80xbf16, #tpu.memory_space<vmem>>, %arg2: memref<80x16xbf16, #tpu.memory_space<vmem>>, %arg3: memref<1x16xf32, #tpu.memory_space<vmem>>, %arg4: memref<1x16xf32, #tpu.memory_space<vmem>>, %arg5: memref<392x16xbf16, #tpu.memory_space<vmem>>) attributes {dimension_semantics = [#tpu.dimension_semantics<parallel>], iteration_bounds = array<i64: 1>, scalar_prefetch = 0 : i64, scratch_operands = 0 : i64, tpu.core_type = #tpu.core_type<tc>, window_params = [{transform_indices = @transform_0, window_bounds = array<i64: 392, 80>}, {pipeline_mode = #tpu.pipeline_mode<synchronous>, transform_indices = @transform_1, window_bounds = array<i64: 80, 16>}, {pipeline_mode = #tpu.pipeline_mode<synchronous>, transform_indices = @transform_2, window_bounds = array<i64: 1, 16>}, {pipeline_mode = #tpu.pipeline_mode<synchronous>, transform_indices = @transform_3, window_bounds = array<i64: 1, 16>}, {transform_indices = @transform_4, window_bounds = array<i64: 392, 16>}]} {
    %c0 = arith.constant 0 : index
    %c0_0 = arith.constant 0 : index
    %0 = vector.load %arg1[%c0, %c0_0] : memref<392x80xbf16, #tpu.memory_space<vmem>>, vector<392x80xbf16>
    %c0_1 = arith.constant 0 : index
    %c0_2 = arith.constant 0 : index
    %1 = vector.load %arg2[%c0_1, %c0_2] : memref<80x16xbf16, #tpu.memory_space<vmem>>, vector<80x16xbf16>
    %cst = arith.constant dense<0.000000e+00> : vector<392x16xf32>
    %2 = tpu.matmul %0, %1, %cst {dimension_numbers = #tpu.dot_dimension_numbers<[1], [0], [0], [1], [0, 0, 1, 1], [], []>} : vector<392x80xbf16>, vector<80x16xbf16>, vector<392x16xf32> -> vector<392x16xf32>
    %c0_3 = arith.constant 0 : index
    %c0_4 = arith.constant 0 : index
    %3 = vector.load %arg3[%c0_3, %c0_4] : memref<1x16xf32, #tpu.memory_space<vmem>>, vector<1x16xf32>
    %4 = vector.broadcast %3 : vector<1x16xf32> to vector<392x16xf32>
    %5 = arith.mulf %2, %4 : vector<392x16xf32>
    %c0_5 = arith.constant 0 : index
    %c0_6 = arith.constant 0 : index
    %6 = vector.load %arg4[%c0_5, %c0_6] : memref<1x16xf32, #tpu.memory_space<vmem>>, vector<1x16xf32>
    %7 = vector.broadcast %6 : vector<1x16xf32> to vector<392x16xf32>
    %8 = arith.addf %5, %7 : vector<392x16xf32>
    %cst_7 = arith.constant 0.000000e+00 : f32
    %9 = vector.broadcast %cst_7 : f32 to vector<392x16xf32>
    %10 = arith.maximumf %8, %9 : vector<392x16xf32>
    %11 = arith.truncf %10 : vector<392x16xf32> to vector<392x16xbf16>
    %c0_8 = arith.constant 0 : index
    %c0_9 = arith.constant 0 : index
    %12 = vector.load %arg5[%c0_8, %c0_9] : memref<392x16xbf16, #tpu.memory_space<vmem>>, vector<392x16xbf16>
    tpu.vector_store %arg5[%c0_8, %c0_9], %11 {strides = array<i32>} : memref<392x16xbf16, #tpu.memory_space<vmem>>, vector<392x16xbf16>,
    return
  }
  func.func @transform_0(%arg0: i32) -> (i32, i32) {
    %c0_i32 = arith.constant 0 : i32
    %c0_i32_0 = arith.constant 0 : i32
    return %arg0, %c0_i32 : i32, i32
  }
  func.func @transform_1(%arg0: i32) -> (i32, i32) {
    %c0_i32 = arith.constant 0 : i32
    %c0_i32_0 = arith.constant 0 : i32
    %c0_i32_1 = arith.constant 0 : i32
    return %c0_i32, %c0_i32_0 : i32, i32
  }
  func.func @transform_2(%arg0: i32) -> (i32, i32) {
    %c0_i32 = arith.constant 0 : i32
    %c0_i32_0 = arith.constant 0 : i32
    %c0_i32_1 = arith.constant 0 : i32
    return %c0_i32, %c0_i32_0 : i32, i32
  }
  func.func @transform_3(%arg0: i32) -> (i32, i32) {
    %c0_i32 = arith.constant 0 : i32
    %c0_i32_0 = arith.constant 0 : i32
    %c0_i32_1 = arith.constant 0 : i32
    return %c0_i32, %c0_i32_0 : i32, i32
  }
  func.func @transform_4(%arg0: i32) -> (i32, i32) {
    %c0_i32 = arith.constant 0 : i32
    %c0_i32_0 = arith.constant 0 : i32
    return %arg0, %c0_i32 : i32, i32
  }
}

module attributes {stable_mosaic.version = 11 : i64} {
  func.func @_gemm_bn_relu_kernel(%arg0: i32, %arg1: memref<72x144xbf16, #tpu.memory_space<vmem>>, %arg2: memref<144x32xbf16, #tpu.memory_space<vmem>>, %arg3: memref<1x32xf32, #tpu.memory_space<vmem>>, %arg4: memref<1x32xf32, #tpu.memory_space<vmem>>, %arg5: memref<72x32xbf16, #tpu.memory_space<vmem>>) attributes {dimension_semantics = [#tpu.dimension_semantics<parallel>], iteration_bounds = array<i64: 1>, scalar_prefetch = 0 : i64, scratch_operands = 0 : i64, tpu.core_type = #tpu.core_type<tc>, window_params = [{transform_indices = @transform_0, window_bounds = array<i64: 72, 144>}, {pipeline_mode = #tpu.pipeline_mode<synchronous>, transform_indices = @transform_1, window_bounds = array<i64: 144, 32>}, {pipeline_mode = #tpu.pipeline_mode<synchronous>, transform_indices = @transform_2, window_bounds = array<i64: 1, 32>}, {pipeline_mode = #tpu.pipeline_mode<synchronous>, transform_indices = @transform_3, window_bounds = array<i64: 1, 32>}, {transform_indices = @transform_4, window_bounds = array<i64: 72, 32>}]} {
    %c0 = arith.constant 0 : index
    %c0_0 = arith.constant 0 : index
    %0 = vector.load %arg1[%c0, %c0_0] : memref<72x144xbf16, #tpu.memory_space<vmem>>, vector<72x144xbf16>
    %c0_1 = arith.constant 0 : index
    %c0_2 = arith.constant 0 : index
    %1 = vector.load %arg2[%c0_1, %c0_2] : memref<144x32xbf16, #tpu.memory_space<vmem>>, vector<144x32xbf16>
    %cst = arith.constant dense<0.000000e+00> : vector<72x32xf32>
    %2 = tpu.matmul %0, %1, %cst {dimension_numbers = #tpu.dot_dimension_numbers<[1], [0], [0], [1], [0, 0, 1, 1], [], []>} : vector<72x144xbf16>, vector<144x32xbf16>, vector<72x32xf32> -> vector<72x32xf32>
    %c0_3 = arith.constant 0 : index
    %c0_4 = arith.constant 0 : index
    %3 = vector.load %arg3[%c0_3, %c0_4] : memref<1x32xf32, #tpu.memory_space<vmem>>, vector<1x32xf32>
    %4 = vector.broadcast %3 : vector<1x32xf32> to vector<72x32xf32>
    %5 = arith.mulf %2, %4 : vector<72x32xf32>
    %c0_5 = arith.constant 0 : index
    %c0_6 = arith.constant 0 : index
    %6 = vector.load %arg4[%c0_5, %c0_6] : memref<1x32xf32, #tpu.memory_space<vmem>>, vector<1x32xf32>
    %7 = vector.broadcast %6 : vector<1x32xf32> to vector<72x32xf32>
    %8 = arith.addf %5, %7 : vector<72x32xf32>
    %cst_7 = arith.constant 0.000000e+00 : f32
    %9 = vector.broadcast %cst_7 : f32 to vector<72x32xf32>
    %10 = arith.maximumf %8, %9 : vector<72x32xf32>
    %11 = arith.truncf %10 : vector<72x32xf32> to vector<72x32xbf16>
    %c0_8 = arith.constant 0 : index
    %c0_9 = arith.constant 0 : index
    %12 = vector.load %arg5[%c0_8, %c0_9] : memref<72x32xbf16, #tpu.memory_space<vmem>>, vector<72x32xbf16>
    tpu.vector_store %arg5[%c0_8, %c0_9], %11 {strides = array<i32>} : memref<72x32xbf16, #tpu.memory_space<vmem>>, vector<72x32xbf16>,
    return
  }
  func.func @transform_0(%arg0: i32) -> (i32, i32) {
    %c0_i32 = arith.constant 0 : i32
    %c0_i32_0 = arith.constant 0 : i32
    return %arg0, %c0_i32 : i32, i32
  }
  func.func @transform_1(%arg0: i32) -> (i32, i32) {
    %c0_i32 = arith.constant 0 : i32
    %c0_i32_0 = arith.constant 0 : i32
    %c0_i32_1 = arith.constant 0 : i32
    return %c0_i32, %c0_i32_0 : i32, i32
  }
  func.func @transform_2(%arg0: i32) -> (i32, i32) {
    %c0_i32 = arith.constant 0 : i32
    %c0_i32_0 = arith.constant 0 : i32
    %c0_i32_1 = arith.constant 0 : i32
    return %c0_i32, %c0_i32_0 : i32, i32
  }
  func.func @transform_3(%arg0: i32) -> (i32, i32) {
    %c0_i32 = arith.constant 0 : i32
    %c0_i32_0 = arith.constant 0 : i32
    %c0_i32_1 = arith.constant 0 : i32
    return %c0_i32, %c0_i32_0 : i32, i32
  }
  func.func @transform_4(%arg0: i32) -> (i32, i32) {
    %c0_i32 = arith.constant 0 : i32
    %c0_i32_0 = arith.constant 0 : i32
    return %arg0, %c0_i32 : i32, i32
  }
}

module attributes {stable_mosaic.version = 11 : i64} {
  func.func @_tail_kernel(%arg0: i32, %arg1: memref<3x3x8x32xbf16, #tpu.memory_space<vmem>>, %arg2: memref<9x32x64xbf16, #tpu.memory_space<vmem>>, %arg3: memref<1x64xf32, #tpu.memory_space<vmem>>, %arg4: memref<1x64xf32, #tpu.memory_space<vmem>>, %arg5: memref<1x64x32xbf16, #tpu.memory_space<vmem>>, %arg6: memref<1x32xf32, #tpu.memory_space<vmem>>, %arg7: memref<32x16xbf16, #tpu.memory_space<vmem>>, %arg8: memref<1x16xf32, #tpu.memory_space<vmem>>, %arg9: memref<8x16xf32, #tpu.memory_space<vmem>>) attributes {dimension_semantics = [#tpu.dimension_semantics<parallel>], iteration_bounds = array<i64: 1>, scalar_prefetch = 0 : i64, scratch_operands = 0 : i64, tpu.core_type = #tpu.core_type<tc>, window_params = [{transform_indices = @transform_0, window_bounds = array<i64: 3, 3, 8, 32>}, {pipeline_mode = #tpu.pipeline_mode<synchronous>, transform_indices = @transform_1, window_bounds = array<i64: 9, 32, 64>}, {pipeline_mode = #tpu.pipeline_mode<synchronous>, transform_indices = @transform_2, window_bounds = array<i64: 1, 64>}, {pipeline_mode = #tpu.pipeline_mode<synchronous>, transform_indices = @transform_3, window_bounds = array<i64: 1, 64>}, {pipeline_mode = #tpu.pipeline_mode<synchronous>, transform_indices = @transform_4, window_bounds = array<i64: 1, 64, 32>}, {pipeline_mode = #tpu.pipeline_mode<synchronous>, transform_indices = @transform_5, window_bounds = array<i64: 1, 32>}, {pipeline_mode = #tpu.pipeline_mode<synchronous>, transform_indices = @transform_6, window_bounds = array<i64: 32, 16>}, {pipeline_mode = #tpu.pipeline_mode<synchronous>, transform_indices = @transform_7, window_bounds = array<i64: 1, 16>}, {transform_indices = @transform_8, window_bounds = array<i64: 8, 16>}]} {
    %c0 = arith.constant 0 : index
    %c0_0 = arith.constant 0 : index
    %0 = vector.load %arg3[%c0, %c0_0] : memref<1x64xf32, #tpu.memory_space<vmem>>, vector<1x64xf32>
    %c0_1 = arith.constant 0 : index
    %c0_2 = arith.constant 0 : index
    %1 = vector.load %arg4[%c0_1, %c0_2] : memref<1x64xf32, #tpu.memory_space<vmem>>, vector<1x64xf32>
    %cst = arith.constant 0.000000e+00 : f32
    %2 = vector.broadcast %cst : f32 to vector<8x32xf32>
    %cst_3 = arith.constant 0.000000e+00 : f32
    %3 = vector.broadcast %cst_3 : f32 to vector<8x64xf32>
    %c0_4 = arith.constant 0 : index
    %c0_5 = arith.constant 0 : index
    %c0_6 = arith.constant 0 : index
    %c0_7 = arith.constant 0 : index
    %4 = vector.load %arg1[%c0_4, %c0_5, %c0_6, %c0_7] : memref<3x3x8x32xbf16, #tpu.memory_space<vmem>>, vector<1x1x8x32xbf16>
    %5 = vector.shape_cast %4 : vector<1x1x8x32xbf16> to vector<8x32xbf16>
    %c0_8 = arith.constant 0 : index
    %c0_9 = arith.constant 0 : index
    %c0_10 = arith.constant 0 : index
    %6 = vector.load %arg2[%c0_8, %c0_9, %c0_10] : memref<9x32x64xbf16, #tpu.memory_space<vmem>>, vector<1x32x64xbf16>
    %7 = vector.shape_cast %6 : vector<1x32x64xbf16> to vector<32x64xbf16>
    %cst_11 = arith.constant dense<0.000000e+00> : vector<8x64xf32>
    %8 = tpu.matmul %5, %7, %cst_11 {dimension_numbers = #tpu.dot_dimension_numbers<[1], [0], [0], [1], [0, 0, 1, 1], [], []>} : vector<8x32xbf16>, vector<32x64xbf16>, vector<8x64xf32> -> vector<8x64xf32>
    %9 = arith.addf %3, %8 : vector<8x64xf32>
    %c0_12 = arith.constant 0 : index
    %c1 = arith.constant 1 : index
    %c0_13 = arith.constant 0 : index
    %c0_14 = arith.constant 0 : index
    %10 = vector.load %arg1[%c0_12, %c1, %c0_13, %c0_14] : memref<3x3x8x32xbf16, #tpu.memory_space<vmem>>, vector<1x1x8x32xbf16>
    %11 = vector.shape_cast %10 : vector<1x1x8x32xbf16> to vector<8x32xbf16>
    %c1_15 = arith.constant 1 : index
    %c0_16 = arith.constant 0 : index
    %c0_17 = arith.constant 0 : index
    %12 = vector.load %arg2[%c1_15, %c0_16, %c0_17] : memref<9x32x64xbf16, #tpu.memory_space<vmem>>, vector<1x32x64xbf16>
    %13 = vector.shape_cast %12 : vector<1x32x64xbf16> to vector<32x64xbf16>
    %cst_18 = arith.constant dense<0.000000e+00> : vector<8x64xf32>
    %14 = tpu.matmul %11, %13, %cst_18 {dimension_numbers = #tpu.dot_dimension_numbers<[1], [0], [0], [1], [0, 0, 1, 1], [], []>} : vector<8x32xbf16>, vector<32x64xbf16>, vector<8x64xf32> -> vector<8x64xf32>
    %15 = arith.addf %9, %14 : vector<8x64xf32>
    %c0_19 = arith.constant 0 : index
    %c2 = arith.constant 2 : index
    %c0_20 = arith.constant 0 : index
    %c0_21 = arith.constant 0 : index
    %16 = vector.load %arg1[%c0_19, %c2, %c0_20, %c0_21] : memref<3x3x8x32xbf16, #tpu.memory_space<vmem>>, vector<1x1x8x32xbf16>
    %17 = vector.shape_cast %16 : vector<1x1x8x32xbf16> to vector<8x32xbf16>
    %c2_22 = arith.constant 2 : index
    %c0_23 = arith.constant 0 : index
    %c0_24 = arith.constant 0 : index
    %18 = vector.load %arg2[%c2_22, %c0_23, %c0_24] : memref<9x32x64xbf16, #tpu.memory_space<vmem>>, vector<1x32x64xbf16>
    %19 = vector.shape_cast %18 : vector<1x32x64xbf16> to vector<32x64xbf16>
    %cst_25 = arith.constant dense<0.000000e+00> : vector<8x64xf32>
    %20 = tpu.matmul %17, %19, %cst_25 {dimension_numbers = #tpu.dot_dimension_numbers<[1], [0], [0], [1], [0, 0, 1, 1], [], []>} : vector<8x32xbf16>, vector<32x64xbf16>, vector<8x64xf32> -> vector<8x64xf32>
    %21 = arith.addf %15, %20 : vector<8x64xf32>
    %c1_26 = arith.constant 1 : index
    %c0_27 = arith.constant 0 : index
    %c0_28 = arith.constant 0 : index
    %c0_29 = arith.constant 0 : index
    %22 = vector.load %arg1[%c1_26, %c0_27, %c0_28, %c0_29] : memref<3x3x8x32xbf16, #tpu.memory_space<vmem>>, vector<1x1x8x32xbf16>
    %23 = vector.shape_cast %22 : vector<1x1x8x32xbf16> to vector<8x32xbf16>
    %c3 = arith.constant 3 : index
    %c0_30 = arith.constant 0 : index
    %c0_31 = arith.constant 0 : index
    %24 = vector.load %arg2[%c3, %c0_30, %c0_31] : memref<9x32x64xbf16, #tpu.memory_space<vmem>>, vector<1x32x64xbf16>
    %25 = vector.shape_cast %24 : vector<1x32x64xbf16> to vector<32x64xbf16>
    %cst_32 = arith.constant dense<0.000000e+00> : vector<8x64xf32>
    %26 = tpu.matmul %23, %25, %cst_32 {dimension_numbers = #tpu.dot_dimension_numbers<[1], [0], [0], [1], [0, 0, 1, 1], [], []>} : vector<8x32xbf16>, vector<32x64xbf16>, vector<8x64xf32> -> vector<8x64xf32>
    %27 = arith.addf %21, %26 : vector<8x64xf32>
    %c1_33 = arith.constant 1 : index
    %c1_34 = arith.constant 1 : index
    %c0_35 = arith.constant 0 : index
    %c0_36 = arith.constant 0 : index
    %28 = vector.load %arg1[%c1_33, %c1_34, %c0_35, %c0_36] : memref<3x3x8x32xbf16, #tpu.memory_space<vmem>>, vector<1x1x8x32xbf16>
    %29 = vector.shape_cast %28 : vector<1x1x8x32xbf16> to vector<8x32xbf16>
    %c4 = arith.constant 4 : index
    %c0_37 = arith.constant 0 : index
    %c0_38 = arith.constant 0 : index
    %30 = vector.load %arg2[%c4, %c0_37, %c0_38] : memref<9x32x64xbf16, #tpu.memory_space<vmem>>, vector<1x32x64xbf16>
    %31 = vector.shape_cast %30 : vector<1x32x64xbf16> to vector<32x64xbf16>
    %cst_39 = arith.constant dense<0.000000e+00> : vector<8x64xf32>
    %32 = tpu.matmul %29, %31, %cst_39 {dimension_numbers = #tpu.dot_dimension_numbers<[1], [0], [0], [1], [0, 0, 1, 1], [], []>} : vector<8x32xbf16>, vector<32x64xbf16>, vector<8x64xf32> -> vector<8x64xf32>
    %33 = arith.addf %27, %32 : vector<8x64xf32>
    %c1_40 = arith.constant 1 : index
    %c2_41 = arith.constant 2 : index
    %c0_42 = arith.constant 0 : index
    %c0_43 = arith.constant 0 : index
    %34 = vector.load %arg1[%c1_40, %c2_41, %c0_42, %c0_43] : memref<3x3x8x32xbf16, #tpu.memory_space<vmem>>, vector<1x1x8x32xbf16>
    %35 = vector.shape_cast %34 : vector<1x1x8x32xbf16> to vector<8x32xbf16>
    %c5 = arith.constant 5 : index
    %c0_44 = arith.constant 0 : index
    %c0_45 = arith.constant 0 : index
    %36 = vector.load %arg2[%c5, %c0_44, %c0_45] : memref<9x32x64xbf16, #tpu.memory_space<vmem>>, vector<1x32x64xbf16>
    %37 = vector.shape_cast %36 : vector<1x32x64xbf16> to vector<32x64xbf16>
    %cst_46 = arith.constant dense<0.000000e+00> : vector<8x64xf32>
    %38 = tpu.matmul %35, %37, %cst_46 {dimension_numbers = #tpu.dot_dimension_numbers<[1], [0], [0], [1], [0, 0, 1, 1], [], []>} : vector<8x32xbf16>, vector<32x64xbf16>, vector<8x64xf32> -> vector<8x64xf32>
    %39 = arith.addf %33, %38 : vector<8x64xf32>
    %c2_47 = arith.constant 2 : index
    %c0_48 = arith.constant 0 : index
    %c0_49 = arith.constant 0 : index
    %c0_50 = arith.constant 0 : index
    %40 = vector.load %arg1[%c2_47, %c0_48, %c0_49, %c0_50] : memref<3x3x8x32xbf16, #tpu.memory_space<vmem>>, vector<1x1x8x32xbf16>
    %41 = vector.shape_cast %40 : vector<1x1x8x32xbf16> to vector<8x32xbf16>
    %c6 = arith.constant 6 : index
    %c0_51 = arith.constant 0 : index
    %c0_52 = arith.constant 0 : index
    %42 = vector.load %arg2[%c6, %c0_51, %c0_52] : memref<9x32x64xbf16, #tpu.memory_space<vmem>>, vector<1x32x64xbf16>
    %43 = vector.shape_cast %42 : vector<1x32x64xbf16> to vector<32x64xbf16>
    %cst_53 = arith.constant dense<0.000000e+00> : vector<8x64xf32>
    %44 = tpu.matmul %41, %43, %cst_53 {dimension_numbers = #tpu.dot_dimension_numbers<[1], [0], [0], [1], [0, 0, 1, 1], [], []>} : vector<8x32xbf16>, vector<32x64xbf16>, vector<8x64xf32> -> vector<8x64xf32>
    %45 = arith.addf %39, %44 : vector<8x64xf32>
    %c2_54 = arith.constant 2 : index
    %c1_55 = arith.constant 1 : index
    %c0_56 = arith.constant 0 : index
    %c0_57 = arith.constant 0 : index
    %46 = vector.load %arg1[%c2_54, %c1_55, %c0_56, %c0_57] : memref<3x3x8x32xbf16, #tpu.memory_space<vmem>>, vector<1x1x8x32xbf16>
    %47 = vector.shape_cast %46 : vector<1x1x8x32xbf16> to vector<8x32xbf16>
    %c7 = arith.constant 7 : index
    %c0_58 = arith.constant 0 : index
    %c0_59 = arith.constant 0 : index
    %48 = vector.load %arg2[%c7, %c0_58, %c0_59] : memref<9x32x64xbf16, #tpu.memory_space<vmem>>, vector<1x32x64xbf16>
    %49 = vector.shape_cast %48 : vector<1x32x64xbf16> to vector<32x64xbf16>
    %cst_60 = arith.constant dense<0.000000e+00> : vector<8x64xf32>
    %50 = tpu.matmul %47, %49, %cst_60 {dimension_numbers = #tpu.dot_dimension_numbers<[1], [0], [0], [1], [0, 0, 1, 1], [], []>} : vector<8x32xbf16>, vector<32x64xbf16>, vector<8x64xf32> -> vector<8x64xf32>
    %51 = arith.addf %45, %50 : vector<8x64xf32>
    %c2_61 = arith.constant 2 : index
    %c2_62 = arith.constant 2 : index
    %c0_63 = arith.constant 0 : index
    %c0_64 = arith.constant 0 : index
    %52 = vector.load %arg1[%c2_61, %c2_62, %c0_63, %c0_64] : memref<3x3x8x32xbf16, #tpu.memory_space<vmem>>, vector<1x1x8x32xbf16>
    %53 = vector.shape_cast %52 : vector<1x1x8x32xbf16> to vector<8x32xbf16>
    %c8 = arith.constant 8 : index
    %c0_65 = arith.constant 0 : index
    %c0_66 = arith.constant 0 : index
    %54 = vector.load %arg2[%c8, %c0_65, %c0_66] : memref<9x32x64xbf16, #tpu.memory_space<vmem>>, vector<1x32x64xbf16>
    %55 = vector.shape_cast %54 : vector<1x32x64xbf16> to vector<32x64xbf16>
    %cst_67 = arith.constant dense<0.000000e+00> : vector<8x64xf32>
    %56 = tpu.matmul %53, %55, %cst_67 {dimension_numbers = #tpu.dot_dimension_numbers<[1], [0], [0], [1], [0, 0, 1, 1], [], []>} : vector<8x32xbf16>, vector<32x64xbf16>, vector<8x64xf32> -> vector<8x64xf32>
    %57 = arith.addf %51, %56 : vector<8x64xf32>
    %58 = vector.broadcast %0 : vector<1x64xf32> to vector<8x64xf32>
    %59 = arith.mulf %57, %58 : vector<8x64xf32>
    %60 = vector.broadcast %1 : vector<1x64xf32> to vector<8x64xf32>
    %61 = arith.addf %59, %60 : vector<8x64xf32>
    %cst_68 = arith.constant 0.000000e+00 : f32
    %62 = vector.broadcast %cst_68 : f32 to vector<8x64xf32>
    %63 = arith.maximumf %61, %62 : vector<8x64xf32>
    %64 = arith.truncf %63 : vector<8x64xf32> to vector<8x64xbf16>
    %c0_69 = arith.constant 0 : index
    %c0_70 = arith.constant 0 : index
    %c0_71 = arith.constant 0 : index
    %65 = vector.load %arg5[%c0_69, %c0_70, %c0_71] : memref<1x64x32xbf16, #tpu.memory_space<vmem>>, vector<1x64x32xbf16>
    %66 = vector.shape_cast %65 : vector<1x64x32xbf16> to vector<64x32xbf16>
    %cst_72 = arith.constant dense<0.000000e+00> : vector<8x32xf32>
    %67 = tpu.matmul %64, %66, %cst_72 {dimension_numbers = #tpu.dot_dimension_numbers<[1], [0], [0], [1], [0, 0, 1, 1], [], []>} : vector<8x64xbf16>, vector<64x32xbf16>, vector<8x32xf32> -> vector<8x32xf32>
    %68 = arith.addf %2, %67 : vector<8x32xf32>
    %c0_73 = arith.constant 0 : index
    %c0_74 = arith.constant 0 : index
    %69 = vector.load %arg6[%c0_73, %c0_74] : memref<1x32xf32, #tpu.memory_space<vmem>>, vector<1x32xf32>
    %70 = vector.broadcast %69 : vector<1x32xf32> to vector<8x32xf32>
    %71 = arith.addf %68, %70 : vector<8x32xf32>
    %cst_75 = arith.constant 0.000000e+00 : f32
    %72 = vector.broadcast %cst_75 : f32 to vector<8x32xf32>
    %73 = arith.maximumf %71, %72 : vector<8x32xf32>
    %74 = arith.truncf %73 : vector<8x32xf32> to vector<8x32xbf16>
    %c0_76 = arith.constant 0 : index
    %c0_77 = arith.constant 0 : index
    %75 = vector.load %arg7[%c0_76, %c0_77] : memref<32x16xbf16, #tpu.memory_space<vmem>>, vector<32x16xbf16>
    %cst_78 = arith.constant dense<0.000000e+00> : vector<8x16xf32>
    %76 = tpu.matmul %74, %75, %cst_78 {dimension_numbers = #tpu.dot_dimension_numbers<[1], [0], [0], [1], [0, 0, 1, 1], [], []>} : vector<8x32xbf16>, vector<32x16xbf16>, vector<8x16xf32> -> vector<8x16xf32>
    %c0_79 = arith.constant 0 : index
    %c0_80 = arith.constant 0 : index
    %77 = vector.load %arg8[%c0_79, %c0_80] : memref<1x16xf32, #tpu.memory_space<vmem>>, vector<1x16xf32>
    %78 = vector.broadcast %77 : vector<1x16xf32> to vector<8x16xf32>
    %79 = arith.addf %76, %78 : vector<8x16xf32>
    %c0_81 = arith.constant 0 : index
    %c0_82 = arith.constant 0 : index
    %80 = vector.load %arg9[%c0_81, %c0_82] : memref<8x16xf32, #tpu.memory_space<vmem>>, vector<8x16xf32>
    tpu.vector_store %arg9[%c0_81, %c0_82], %79 {strides = array<i32>} : memref<8x16xf32, #tpu.memory_space<vmem>>, vector<8x16xf32>,
    return
  }
  func.func @transform_0(%arg0: i32) -> (i32, i32, i32, i32) {
    %c0_i32 = arith.constant 0 : i32
    %c0_i32_0 = arith.constant 0 : i32
    %c0_i32_1 = arith.constant 0 : i32
    %c0_i32_2 = arith.constant 0 : i32
    return %c0_i32, %c0_i32_0, %arg0, %c0_i32_1 : i32, i32, i32, i32
  }
  func.func @transform_1(%arg0: i32) -> (i32, i32, i32) {
    %c0_i32 = arith.constant 0 : i32
    %c0_i32_0 = arith.constant 0 : i32
    %c0_i32_1 = arith.constant 0 : i32
    %c0_i32_2 = arith.constant 0 : i32
    return %c0_i32, %c0_i32_0, %c0_i32_1 : i32, i32, i32
  }
  func.func @transform_2(%arg0: i32) -> (i32, i32) {
    %c0_i32 = arith.constant 0 : i32
    %c0_i32_0 = arith.constant 0 : i32
    %c0_i32_1 = arith.constant 0 : i32
    return %c0_i32, %c0_i32_0 : i32, i32
  }
  func.func @transform_3(%arg0: i32) -> (i32, i32) {
    %c0_i32 = arith.constant 0 : i32
    %c0_i32_0 = arith.constant 0 : i32
    %c0_i32_1 = arith.constant 0 : i32
    return %c0_i32, %c0_i32_0 : i32, i32
  }
  func.func @transform_4(%arg0: i32) -> (i32, i32, i32) {
    %c0_i32 = arith.constant 0 : i32
    %c0_i32_0 = arith.constant 0 : i32
    %c0_i32_1 = arith.constant 0 : i32
    %c0_i32_2 = arith.constant 0 : i32
    return %c0_i32, %c0_i32_0, %c0_i32_1 : i32, i32, i32
  }
  func.func @transform_5(%arg0: i32) -> (i32, i32) {
    %c0_i32 = arith.constant 0 : i32
    %c0_i32_0 = arith.constant 0 : i32
    %c0_i32_1 = arith.constant 0 : i32
    return %c0_i32, %c0_i32_0 : i32, i32
  }
  func.func @transform_6(%arg0: i32) -> (i32, i32) {
    %c0_i32 = arith.constant 0 : i32
    %c0_i32_0 = arith.constant 0 : i32
    %c0_i32_1 = arith.constant 0 : i32
    return %c0_i32, %c0_i32_0 : i32, i32
  }
  func.func @transform_7(%arg0: i32) -> (i32, i32) {
    %c0_i32 = arith.constant 0 : i32
    %c0_i32_0 = arith.constant 0 : i32
    %c0_i32_1 = arith.constant 0 : i32
    return %c0_i32, %c0_i32_0 : i32, i32
  }
  func.func @transform_8(%arg0: i32) -> (i32, i32) {
    %c0_i32 = arith.constant 0 : i32
    %c0_i32_0 = arith.constant 0 : i32
    return %arg0, %c0_i32 : i32, i32
  }
}

</mosaic_0001>

<bundles_post_ra>
// kernel: forward.4
= control target key start
LH: loop header
LB: loop body
LE: loop exit
PB: predicated region body
PF: predicated region fallthrough
CT: control target
= control target key end

     0   :  { %s2336_s15 = smov 0   ;;  %s2338_s16 = smov 0   ;;  %s2937_s0 = inlined_call_operand.vmem [shape: bf16[1800,80], index: 0, kind: input, shape index: {}]   ;;  %s2938_s1 = inlined_call_operand.vmem [shape: bf16[80,8], index: 1, kind: input, shape index: {}]   ;;  %s2939_s2 = inlined_call_operand.vmem [shape: f32[1,8], index: 2, kind: input, shape index: {}]   ;;  %s2940_s3 = inlined_call_operand.vmem [shape: f32[1,8], index: 3, kind: input, shape index: {}]   ;;  %s2941_s4 = inlined_call_operand.vmem [shape: bf16[1800,8], index: 4, kind: output, shape index: {}]  }
   0x1   :  { %s2340_s17 = smov 0  }
   0x2 LB: > { %s2349_s18 = sadd.s32 4294967295, %s2275_s17   ;;  %s2351_s19 = sadd.s32 1, %s2275_s17   ;;  %s2275_s17 = sphi %s2340_s17, %s2948_s17   ;;  %s2271_s16 = sphi %s2338_s16, %s2947_s16   ;;  %s2267_s15 = sphi %s2336_s15, %s2946_s15  }
   0x3   : > { %s107_s20 = ssub.s32 %s2275_s17, %s2351_s19  ;;  %s110_s21 = sadd.s32 1, %s2271_s16 }
   0x4   : > { %p108_p0 = scmp.eq.s32.totalorder %s107_s20, 0  ;;  %p120_p1 = scmp.ne.s32.totalorder %s2271_s16, %s2267_s15 }
   0x5   : > { %p121_p2 = scmp.eq.s32.totalorder %s2349_s18, 3  ;;  %p1727_p3 = scmp.ge.s32.totalorder %s2275_s17, 1 }
   0x6   : > { %s2359_s22 = scalar_select %p108_p0, %s2271_s16, %s110_s21  }
   0x7   : > { %p2361_p4 = por %p121_p2, %p120_p1  ;;  %p171_p5 = scmp.lt.s32.totalorder %s2275_s17, 5 }
   0x9   : > { %p172_p6 = pnand %p1727_p3, %p171_p5 }
   0xa   : > { %v2183_v0 = vld [vmem:[%s2938_s1] sm:$0xff] (!%p172_p6)   ;;  %v2309_v1 = vmov (!%p172_p6), 0.0   ;;  %v2184_v2 = vld [vmem:[%s2938_s1 + $0x8] sm:$0xff] (!%p172_p6)   ;;  %s2374_s28 = smul.u32 (!%p172_p6), 57, %s2349_s18  ;;  %vm2310_vm0 = vmmov (!%p172_p6), 0   ;;  %v2185_v3 = vld [vmem:[%s2938_s1 + $0x10] sm:$0xff] (!%p172_p6)  }
   0xb   : > { %175 = sbr.rel (%p172_p6) target bundleno = 465 (0x1d1), region = 36  ;;  %1955 = vmatprep.subr.bf16.mxu0 (!%p172_p6), %v2309_v1  ;;  %2081 = vmatprep.subr.bf16.mxu1 (!%p172_p6), %v2309_v1  ;;  %v2186_v4 = vld [vmem:[%s2938_s1 + $0x18] sm:$0xff] (!%p172_p6)   ;;  %v2187_v5 = vld [vmem:[%s2938_s1 + $0x20] sm:$0xff] (!%p172_p6)   ;;  %vm460_vm1 = vcmask (!%p172_p6), 654336   ;;  %s197_s20 = sand.u32 (!%p172_p6), 1, %s2267_s15   ;;  %vm1226_vm2 = vcmask (!%p172_p6), 60416  }
   0xc   : > { %1956 = vmatpush3.bf16.msra.mxu0 (!%p172_p6), %v2183_v0  ;;  %2086 = vmatpush3.bf16.msra.mxu1 (!%p172_p6), %v2183_v0  ;;  %p205_p7 = scmp.lt.s32.totalorder (!%p172_p6), %s2374_s28, 224  ;;  %v2519_v35 = vld [vmem:[%s2939_s2] ss:$0 sm:$0xff] (!%p172_p6)  ;;  %s2091_s25 = smul.u32 (!%p172_p6), 228, %s197_s20 }
   0xd   : > { %1957 = vmatprep.subr.bf16.mxu0 (!%p172_p6), %v2309_v1  ;;  %2082 = vmatprep.subr.bf16.mxu1 (!%p172_p6), %v2309_v1  ;;  %v2525_v37 = vld [vmem:[%s2940_s3] ss:$0 sm:$0xff] (!%p172_p6) }
   0xe   : > { %1965 = vmatprep.mubr.msk.bf16.mxu0 (!%p172_p6), %vm2310_vm0, %v2309_v1  ;;  %2025 = vmatprep.mubr.msk.bf16.mxu1 (!%p172_p6), %vm2310_vm0, %v2309_v1  ;;  %s2535_s15 = scalar_lea.vmem (!%p172_p6), [#allocation2], %s2091_s25  }
  0x10   : > { %1958 = vmatpush3.bf16.msra.mxu0 (!%p172_p6), %v2184_v2  ;;  %2087 = vmatpush3.bf16.msra.mxu1 (!%p172_p6), %v2184_v2 }
  0x11   : > { %1959 = vmatprep.subr.bf16.mxu0 (!%p172_p6), %v2309_v1  ;;  %2083 = vmatprep.subr.bf16.mxu1 (!%p172_p6), %v2309_v1 }
  0x12   : > { %s206_s5 = scalar_select %p205_p7, %s2374_s28, 224 }
  0x13   : > { %s1292_s26 = ssub.s32 (%p2361_p4), 225, %s2374_s28  ;;  %s1920_s27 = smul.u32 (%p2361_p4), 228, %s2349_s18 }
  0x14   : > { %s1728_s6 = sshll.u32 %s206_s5, 2  ;;  %1960 = vmatpush3.bf16.msra.mxu0 %v2185_v3  ;;  %2088 = vmatpush3.bf16.msra.mxu1 %v2185_v3  ;;  %p1293_p8 = scmp.lt.s32.totalorder (%p2361_p4), %s1292_s26, 57 }
  0x15   : > { %s2392_s9 = scalar_lea.vmem %s2937_s0, %s1728_s6  ;;  %1961 = vmatprep.subr.bf16.mxu0 %v2309_v1  ;;  %2084 = vmatprep.subr.bf16.mxu1 %v2309_v1  ;;  %s2764_s5 = scalar_lea.vmem (%p2361_p4), %s2941_s4, %s1920_s27  }
  0x16   : > { %v2188_v6 = vld [vmem:[%s2392_s9] sm:$0xff]   ;;  %v2189_v7 = vld [vmem:[%s2392_s9 + $0x78] sm:$0xff]   ;;  %v2190_v8 = vld [vmem:[%s2392_s9 + $0x8] sm:$0xff]  }
  0x17   : > { %v2191_v9 = vld [vmem:[%s2392_s9 + $0x80] sm:$0xff]   ;;  %v2192_v10 = vld [vmem:[%s2392_s9 + $0x10] sm:$0xff]   ;;  %v2193_v11 = vld [vmem:[%s2392_s9 + $0x88] sm:$0xff]  }
  0x18   : > { %1962 = vmatpush3.bf16.msra.mxu0 %v2186_v4  ;;  %2089 = vmatpush3.bf16.msra.mxu1 %v2186_v4  ;;  %v2194_v12 = vld [vmem:[%s2392_s9 + $0x18] sm:$0xff]   ;;  %v2195_v13 = vld [vmem:[%s2392_s9 + $0x90] sm:$0xff]   ;;  %v2196_v14 = vld [vmem:[%s2392_s9 + $0x20] sm:$0xff]  }
  0x19   : > { %1963 = vmatprep.subr.bf16.mxu0 %v2309_v1  ;;  %2085 = vmatprep.subr.bf16.mxu1 %v2309_v1  ;;  %v2197_v15 = vld [vmem:[%s2392_s9 + $0x98] sm:$0xff]   ;;  %v2198_v16 = vld [vmem:[%s2392_s9 + $0x28] sm:$0xff]   ;;  %v2199_v17 = vld [vmem:[%s2392_s9 + $0xa0] sm:$0xff]  }
  0x1a   : > { %v2200_v18 = vld [vmem:[%s2392_s9 + $0x30] sm:$0xff]   ;;  %v2201_v19 = vld [vmem:[%s2392_s9 + $0xa8] sm:$0xff]   ;;  %v2202_v20 = vld [vmem:[%s2392_s9 + $0x38] sm:$0xff]  }
  0x1b   : > { %v2203_v21 = vld [vmem:[%s2392_s9 + $0xb0] sm:$0xff]   ;;  %v2204_v22 = vld [vmem:[%s2392_s9 + $0x40] sm:$0xff]   ;;  %v2205_v23 = vld [vmem:[%s2392_s9 + $0xb8] sm:$0xff]  }
  0x1c   : > { %1964 = vmatpush3.bf16.msra.mxu0 %v2187_v5  ;;  %2090 = vmatpush3.bf16.msra.mxu1 %v2187_v5  ;;  %v2206_v24 = vld [vmem:[%s2392_s9 + $0x48] sm:$0xff]   ;;  %v2207_v25 = vld [vmem:[%s2392_s9 + $0xc0] sm:$0xff]   ;;  %v2208_v26 = vld [vmem:[%s2392_s9 + $0x50] sm:$0xff]  }
  0x1d   : > { %v2209_v27 = vld [vmem:[%s2392_s9 + $0xc8] sm:$0xff]   ;;  %v2210_v28 = vld [vmem:[%s2392_s9 + $0x58] sm:$0xff]   ;;  %v2211_v29 = vld [vmem:[%s2392_s9 + $0xd0] sm:$0xff]  }
  0x1e   : > { %v2212_v30 = vld [vmem:[%s2392_s9 + $0x60] sm:$0xff]   ;;  %v2213_v31 = vld [vmem:[%s2392_s9 + $0xd8] sm:$0xff]   ;;  %v2214_v32 = vld [vmem:[%s2392_s9 + $0x68] sm:$0xff]  }
  0x1f   : > { %1966 = vmatmul.mubr.msk.bf16.vlgmr.msra.gmra.mrb[0].mxu0 %vm460_vm1, %v2188_v6  ;;  %2026 = vmatmul.mubr.msk.bf16.vlgmr.msra.gmra.mrb[0].mxu1 %vm460_vm1, %v2189_v7  ;;  %v2215_v33 = vld [vmem:[%s2392_s9 + $0xe0] ss:$0 sps:$4 sm:$0xff]   ;;  %v2216_v34 = vld [vmem:[%s2392_s9 + $0x70] sm:$0xff]  }
  0x20   : > { %1969 = vmatprep.mubr.msk.bf16.mxu0 %vm2310_vm0, %v2309_v1  ;;  %2029 = vmatprep.mubr.msk.bf16.mxu1 %vm2310_vm0, %v2309_v1 }
  0x27   : > { %1970 = vmatmul.mubr.msk.bf16.gmra.mrb[4].mxu0 %vm460_vm1, %v2190_v8  ;;  %2030 = vmatmul.mubr.msk.bf16.gmra.mrb[4].mxu1 %vm460_vm1, %v2191_v9 }
  0x28   : > { %1973 = vmatprep.mubr.msk.bf16.mxu0 %vm2310_vm0, %v2309_v1  ;;  %2033 = vmatprep.mubr.msk.bf16.mxu1 %vm2310_vm0, %v2309_v1 }
  0x2f   : > { %1974 = vmatmul.mubr.msk.bf16.gmra.mrb[8].mxu0 %vm460_vm1, %v2192_v10  ;;  %2034 = vmatmul.mubr.msk.bf16.gmra.mrb[8].mxu1 %vm460_vm1, %v2193_v11 }
  0x30   : > { %1977 = vmatprep.mubr.msk.bf16.mxu0 %vm2310_vm0, %v2309_v1  ;;  %2037 = vmatprep.mubr.msk.bf16.mxu1 %vm2310_vm0, %v2309_v1 }
  0x37   : > { %1978 = vmatmul.mubr.msk.bf16.gmra.mrb[12].mxu0 %vm460_vm1, %v2194_v12  ;;  %2038 = vmatmul.mubr.msk.bf16.gmra.mrb[12].mxu1 %vm460_vm1, %v2195_v13 }
  0x38   : > { %1981 = vmatprep.mubr.msk.bf16.mxu0 %vm2310_vm0, %v2309_v1  ;;  %2041 = vmatprep.mubr.msk.bf16.mxu1 %vm2310_vm0, %v2309_v1 }
  0x3f   : > { %1982 = vmatmul.mubr.msk.bf16.gmra.mrb[16].mxu0 %vm460_vm1, %v2196_v14  ;;  %2042 = vmatmul.mubr.msk.bf16.gmra.mrb[16].mxu1 %vm460_vm1, %v2197_v15 }
  0x40   : > { %1985 = vmatprep.mubr.msk.bf16.mxu0 %vm2310_vm0, %v2309_v1  ;;  %2045 = vmatprep.mubr.msk.bf16.mxu1 %vm2310_vm0, %v2309_v1 }
  0x47   : > { %1986 = vmatmul.mubr.msk.bf16.gmra.mrb[20].mxu0 %vm460_vm1, %v2198_v16  ;;  %2046 = vmatmul.mubr.msk.bf16.gmra.mrb[20].mxu1 %vm460_vm1, %v2199_v17 }
  0x48   : > { %1989 = vmatprep.mubr.msk.bf16.mxu0 %vm2310_vm0, %v2309_v1  ;;  %2049 = vmatprep.mubr.msk.bf16.mxu1 %vm2310_vm0, %v2309_v1 }
  0x4f   : > { %1990 = vmatmul.mubr.msk.bf16.gmra.mrb[24].mxu0 %vm460_vm1, %v2200_v18  ;;  %2050 = vmatmul.mubr.msk.bf16.gmra.mrb[24].mxu1 %vm460_vm1, %v2201_v19 }
  0x50   : > { %1993 = vmatprep.mubr.msk.bf16.mxu0 %vm2310_vm0, %v2309_v1  ;;  %2053 = vmatprep.mubr.msk.bf16.mxu1 %vm2310_vm0, %v2309_v1 }
  0x57   : > { %1994 = vmatmul.mubr.msk.bf16.gmra.mrb[28].mxu0 %vm460_vm1, %v2202_v20  ;;  %2054 = vmatmul.mubr.msk.bf16.gmra.mrb[28].mxu1 %vm460_vm1, %v2203_v21 }
  0x58   : > { %1997 = vmatprep.mubr.msk.bf16.mxu0 %vm2310_vm0, %v2309_v1  ;;  %2057 = vmatprep.mubr.msk.bf16.mxu1 %vm2310_vm0, %v2309_v1 }
  0x5f   : > { %1998 = vmatmul.mubr.msk.bf16.gmra.mrb[32].mxu0 %vm460_vm1, %v2204_v22  ;;  %2058 = vmatmul.mubr.msk.bf16.gmra.mrb[32].mxu1 %vm460_vm1, %v2205_v23 }
  0x60   : > { %2001 = vmatprep.mubr.msk.bf16.mxu0 %vm2310_vm0, %v2309_v1  ;;  %2061 = vmatprep.mubr.msk.bf16.mxu1 %vm2310_vm0, %v2309_v1 }
  0x67   : > { %2002 = vmatmul.mubr.msk.bf16.gmra.mrb[36].mxu0 %vm460_vm1, %v2206_v24  ;;  %2062 = vmatmul.mubr.msk.bf16.gmra.mrb[36].mxu1 %vm460_vm1, %v2207_v25 }
  0x68   : > { %2005 = vmatprep.mubr.msk.bf16.mxu0 %vm2310_vm0, %v2309_v1  ;;  %2065 = vmatprep.mubr.msk.bf16.mxu1 %vm2310_vm0, %v2309_v1 }
  0x6f   : > { %2006 = vmatmul.mubr.msk.bf16.gmra.mrb[40].mxu0 %vm460_vm1, %v2208_v26  ;;  %2066 = vmatmul.mubr.msk.bf16.gmra.mrb[40].mxu1 %vm460_vm1, %v2209_v27 }
  0x70   : > { %2009 = vmatprep.mubr.msk.bf16.mxu0 %vm2310_vm0, %v2309_v1  ;;  %2069 = vmatprep.mubr.msk.bf16.mxu1 %vm2310_vm0, %v2309_v1 }
  0x77   : > { %2010 = vmatmul.mubr.msk.bf16.gmra.mrb[44].mxu0 %vm460_vm1, %v2210_v28  ;;  %2070 = vmatmul.mubr.msk.bf16.gmra.mrb[44].mxu1 %vm460_vm1, %v2211_v29 }
  0x78   : > { %2013 = vmatprep.mubr.msk.bf16.mxu0 %vm2310_vm0, %v2309_v1  ;;  %2073 = vmatprep.mubr.msk.bf16.mxu1 %vm2310_vm0, %v2309_v1 }
  0x7f   : > { %2014 = vmatmul.mubr.msk.bf16.gmra.mrb[48].mxu0 %vm460_vm1, %v2212_v30  ;;  %2074 = vmatmul.mubr.msk.bf16.gmra.mrb[48].mxu1 %vm460_vm1, %v2213_v31 }
  0x80   : > { %2017 = vmatprep.mubr.msk.bf16.mxu0 %vm2310_vm0, %v2309_v1  ;;  %2077 = vmatprep.mubr.msk.bf16.mxu1 %vm2310_vm0, %v2309_v1 }
  0x87   : > { %2018 = vmatmul.mubr.msk.bf16.gmra.mrb[52].mxu0 %vm460_vm1, %v2214_v32  ;;  %2078 = vmatmul.mubr.msk.bf16.gmra.mrb[52].mxu1 %vm460_vm1, %v2215_v33 }
  0x88   : > { %2021 = vmatprep.mubr.msk.bf16.mxu0 %vm2310_vm0, %v2309_v1 }
  0x8f   : > { %2022 = vmatmul.mubr.msk.bf16.gmra.mrb[56].mxu0 %vm460_vm1, %v2216_v34 }
  0xf2   : > { %v582_v36 = vpop.f32.mrb[0].mxu0  ;;  %v702_v38 = vpop.f32.mrb[0].mxu1 }
  0xf3   : > { %v819_v39 = vmul.f32 %v2519_v35, %v582_v36  ;;  %v1967_v40 = vpop.f32.mrb[1].mxu0  ;;  %v849_v41 = vmul.f32 %v2519_v35, %v702_v38  ;;  %v2027_v42 = vpop.f32.mrb[1].mxu1 }
  0xf4   : > { %v585_v43 = vpop.f32.mrb[2].mxu0  ;;  %v705_v44 = vpop.f32.mrb[2].mxu1 }
  0xf5   : > { %v883_v45 = vadd.f32 %v2525_v37, %v819_v39  ;;  %v820_v46 = vmul.f32 %v2519_v35, %v585_v43  ;;  %v1968_v47 = vpop.f32.mrb[3].mxu0  ;;  %v913_v48 = vadd.f32 %v2525_v37, %v849_v41  ;;  %v850_v49 = vmul.f32 %v2519_v35, %v705_v44  ;;  %v2028_v50 = vpop.f32.mrb[3].mxu1 }
  0xf7   : > { %v940_v51 = vmax.f32 %v883_v45, 0.0  ;;  %v884_v52 = vadd.f32 %v2525_v37, %v820_v46  ;;  %v970_v53 = vmax.f32 %v913_v48, 0.0  ;;  %v914_v54 = vadd.f32 %v2525_v37, %v850_v49 }
  0xf9   : > { %v1863_v55 = vpack.c.bf16 %v940_v51, %v940_v51  ;;  %v941_v56 = vmax.f32 %v884_v52, 0.0  ;;  %v1893_v57 = vpack.c.bf16 %v970_v53, %v970_v53  ;;  %v971_v58 = vmax.f32 %v914_v54, 0.0 }
  0xfa   : > { %v590_v59 = vpop.f32.mrb[4].mxu0  ;;  %v710_v60 = vpop.f32.mrb[4].mxu1 }
  0xfb   : > { %1227 = vst.msk [vmem:[%s2535_s15] sm:$0xf] %vm1226_vm2, %v1863_v55  ;;  %v1864_v61 = vpack.c.bf16 %v941_v56, %v941_v56  ;;  %1257 = vst.msk [vmem:[%s2535_s15 + $0x78] sm:$0xf] %vm1226_vm2, %v1893_v57  ;;  %v821_v62 = vmul.f32 %v2519_v35, %v590_v59  ;;  %v1971_v63 = vpop.f32.mrb[5].mxu0  ;;  %v1894_v0 = vpack.c.bf16 %v971_v58, %v971_v58  ;;  %v2031_v2 = vpop.f32.mrb[5].mxu1 }
  0xfc   : > { %v851_v1 = vmul.f32 %v2519_v35, %v710_v60  ;;  %v593_v3 = vpop.f32.mrb[6].mxu0  ;;  %v713_v4 = vpop.f32.mrb[6].mxu1 }
  0xfd   : > { %1228 = vst.msk [vmem:[%s2535_s15 + $0x4] sm:$0xf] %vm1226_vm2, %v1864_v61  ;;  %v885_v5 = vadd.f32 %v2525_v37, %v821_v62  ;;  %1258 = vst.msk [vmem:[%s2535_s15 + $0x7c] sm:$0xf] %vm1226_vm2, %v1894_v0  ;;  %v822_v6 = vmul.f32 %v2519_v35, %v593_v3  ;;  %v1972_v7 = vpop.f32.mrb[7].mxu0  ;;  %v852_v9 = vmul.f32 %v2519_v35, %v713_v4  ;;  %v2032_v10 = vpop.f32.mrb[7].mxu1 }
  0xfe   : > { %v915_v8 = vadd.f32 %v2525_v37, %v851_v1 }
  0xff   : > { %v942_v11 = vmax.f32 %v885_v5, 0.0  ;;  %v886_v12 = vadd.f32 %v2525_v37, %v822_v6  ;;  %v916_v14 = vadd.f32 %v2525_v37, %v852_v9 }
 0x100   : > { %v972_v13 = vmax.f32 %v915_v8, 0.0 }
 0x101   : > { %v1865_v15 = vpack.c.bf16 %v942_v11, %v942_v11  ;;  %v943_v16 = vmax.f32 %v886_v12, 0.0  ;;  %v973_v18 = vmax.f32 %v916_v14, 0.0 }
 0x102   : > { %v1895_v17 = vpack.c.bf16 %v972_v13, %v972_v13  ;;  %v598_v19 = vpop.f32.mrb[8].mxu0  ;;  %v718_v20 = vpop.f32.mrb[8].mxu1 }
 0x103   : > { %1229 = vst.msk [vmem:[%s2535_s15 + $0x8] sm:$0xf] %vm1226_vm2, %v1865_v15  ;;  %v1866_v21 = vpack.c.bf16 %v943_v16, %v943_v16  ;;  %v823_v22 = vmul.f32 %v2519_v35, %v598_v19  ;;  %v1975_v23 = vpop.f32.mrb[9].mxu0  ;;  %v1896_v24 = vpack.c.bf16 %v973_v18, %v973_v18  ;;  %v853_v25 = vmul.f32 %v2519_v35, %v718_v20  ;;  %v2035_v26 = vpop.f32.mrb[9].mxu1 }
 0x104   : > { %1259 = vst.msk [vmem:[%s2535_s15 + $0x80] sm:$0xf] %vm1226_vm2, %v1895_v17  ;;  %v601_v27 = vpop.f32.mrb[10].mxu0  ;;  %v721_v28 = vpop.f32.mrb[10].mxu1 }
 0x105   : > { %1230 = vst.msk [vmem:[%s2535_s15 + $0xc] sm:$0xf] %vm1226_vm2, %v1866_v21  ;;  %v887_v29 = vadd.f32 %v2525_v37, %v823_v22  ;;  %1260 = vst.msk [vmem:[%s2535_s15 + $0x84] sm:$0xf] %vm1226_vm2, %v1896_v24  ;;  %v824_v30 = vmul.f32 %v2519_v35, %v601_v27  ;;  %v1976_v31 = vpop.f32.mrb[11].mxu0  ;;  %v917_v32 = vadd.f32 %v2525_v37, %v853_v25  ;;  %v2036_v34 = vpop.f32.mrb[11].mxu1 }
 0x106   : > { %v854_v33 = vmul.f32 %v2519_v35, %v721_v28 }
 0x107   : > { %v944_v36 = vmax.f32 %v887_v29, 0.0  ;;  %v888_v38 = vadd.f32 %v2525_v37, %v824_v30  ;;  %v974_v39 = vmax.f32 %v917_v32, 0.0 }
 0x108   : > { %v918_v40 = vadd.f32 %v2525_v37, %v854_v33 }
 0x109   : > { %v1867_v41 = vpack.c.bf16 %v944_v36, %v944_v36  ;;  %v945_v42 = vmax.f32 %v888_v38, 0.0  ;;  %v1897_v43 = vpack.c.bf16 %v974_v39, %v974_v39 }
 0x10a   : > { %v975_v44 = vmax.f32 %v918_v40, 0.0  ;;  %v606_v45 = vpop.f32.mrb[12].mxu0  ;;  %v726_v46 = vpop.f32.mrb[12].mxu1 }
 0x10b   : > { %1231 = vst.msk [vmem:[%s2535_s15 + $0x10] sm:$0xf] %vm1226_vm2, %v1867_v41  ;;  %v1868_v47 = vpack.c.bf16 %v945_v42, %v945_v42  ;;  %1261 = vst.msk [vmem:[%s2535_s15 + $0x88] sm:$0xf] %vm1226_vm2, %v1897_v43  ;;  %v825_v48 = vmul.f32 %v2519_v35, %v606_v45  ;;  %v1979_v49 = vpop.f32.mrb[13].mxu0  ;;  %v855_v51 = vmul.f32 %v2519_v35, %v726_v46  ;;  %v2039_v52 = vpop.f32.mrb[13].mxu1 }
 0x10c   : > { %v1898_v50 = vpack.c.bf16 %v975_v44, %v975_v44  ;;  %v609_v53 = vpop.f32.mrb[14].mxu0  ;;  %v729_v54 = vpop.f32.mrb[14].mxu1 }
 0x10d   : > { %1232 = vst.msk [vmem:[%s2535_s15 + $0x14] sm:$0xf] %vm1226_vm2, %v1868_v47  ;;  %v889_v55 = vadd.f32 %v2525_v37, %v825_v48  ;;  %v826_v56 = vmul.f32 %v2519_v35, %v609_v53  ;;  %v1980_v57 = vpop.f32.mrb[15].mxu0  ;;  %v919_v58 = vadd.f32 %v2525_v37, %v855_v51  ;;  %v856_v59 = vmul.f32 %v2519_v35, %v729_v54  ;;  %v2040_v60 = vpop.f32.mrb[15].mxu1 }
 0x10e   : > { %1262 = vst.msk [vmem:[%s2535_s15 + $0x8c] sm:$0xf] %vm1226_vm2, %v1898_v50 }
 0x10f   : > { %v946_v61 = vmax.f32 %v889_v55, 0.0  ;;  %v890_v62 = vadd.f32 %v2525_v37, %v826_v56  ;;  %v976_v63 = vmax.f32 %v919_v58, 0.0  ;;  %v920_v0 = vadd.f32 %v2525_v37, %v856_v59 }
 0x111   : > { %v1869_v1 = vpack.c.bf16 %v946_v61, %v946_v61  ;;  %v947_v2 = vmax.f32 %v890_v62, 0.0  ;;  %v1899_v3 = vpack.c.bf16 %v976_v63, %v976_v63  ;;  %v977_v4 = vmax.f32 %v920_v0, 0.0 }
 0x112   : > { %v614_v5 = vpop.f32.mrb[16].mxu0  ;;  %v734_v6 = vpop.f32.mrb[16].mxu1 }
 0x113   : > { %1233 = vst.msk [vmem:[%s2535_s15 + $0x18] sm:$0xf] %vm1226_vm2, %v1869_v1  ;;  %v1870_v7 = vpack.c.bf16 %v947_v2, %v947_v2  ;;  %1263 = vst.msk [vmem:[%s2535_s15 + $0x90] sm:$0xf] %vm1226_vm2, %v1899_v3  ;;  %v827_v8 = vmul.f32 %v2519_v35, %v614_v5  ;;  %v1983_v9 = vpop.f32.mrb[17].mxu0  ;;  %v1900_v10 = vpack.c.bf16 %v977_v4, %v977_v4  ;;  %v2043_v12 = vpop.f32.mrb[17].mxu1 }
 0x114   : > { %v857_v11 = vmul.f32 %v2519_v35, %v734_v6  ;;  %v617_v13 = vpop.f32.mrb[18].mxu0  ;;  %v737_v14 = vpop.f32.mrb[18].mxu1 }
 0x115   : > { %1234 = vst.msk [vmem:[%s2535_s15 + $0x1c] sm:$0xf] %vm1226_vm2, %v1870_v7  ;;  %v891_v15 = vadd.f32 %v2525_v37, %v827_v8  ;;  %1264 = vst.msk [vmem:[%s2535_s15 + $0x94] sm:$0xf] %vm1226_vm2, %v1900_v10  ;;  %v828_v16 = vmul.f32 %v2519_v35, %v617_v13  ;;  %v1984_v17 = vpop.f32.mrb[19].mxu0  ;;  %v858_v19 = vmul.f32 %v2519_v35, %v737_v14  ;;  %v2044_v20 = vpop.f32.mrb[19].mxu1 }
 0x116   : > { %v921_v18 = vadd.f32 %v2525_v37, %v857_v11 }
 0x117   : > { %v948_v21 = vmax.f32 %v891_v15, 0.0  ;;  %v892_v22 = vadd.f32 %v2525_v37, %v828_v16  ;;  %v922_v24 = vadd.f32 %v2525_v37, %v858_v19 }
 0x118   : > { %v978_v23 = vmax.f32 %v921_v18, 0.0 }
 0x119   : > { %v1871_v25 = vpack.c.bf16 %v948_v21, %v948_v21  ;;  %v949_v26 = vmax.f32 %v892_v22, 0.0  ;;  %v979_v28 = vmax.f32 %v922_v24, 0.0 }
 0x11a   : > { %v1901_v27 = vpack.c.bf16 %v978_v23, %v978_v23  ;;  %v622_v29 = vpop.f32.mrb[20].mxu0  ;;  %v742_v30 = vpop.f32.mrb[20].mxu1 }
 0x11b   : > { %1235 = vst.msk [vmem:[%s2535_s15 + $0x20] sm:$0xf] %vm1226_vm2, %v1871_v25  ;;  %v1872_v31 = vpack.c.bf16 %v949_v26, %v949_v26  ;;  %v829_v32 = vmul.f32 %v2519_v35, %v622_v29  ;;  %v1987_v33 = vpop.f32.mrb[21].mxu0  ;;  %v1902_v34 = vpack.c.bf16 %v979_v28, %v979_v28  ;;  %v859_v36 = vmul.f32 %v2519_v35, %v742_v30  ;;  %v2047_v38 = vpop.f32.mrb[21].mxu1 }
 0x11c   : > { %1265 = vst.msk [vmem:[%s2535_s15 + $0x98] sm:$0xf] %vm1226_vm2, %v1901_v27  ;;  %v625_v39 = vpop.f32.mrb[22].mxu0  ;;  %v745_v40 = vpop.f32.mrb[22].mxu1 }
 0x11d   : > { %1236 = vst.msk [vmem:[%s2535_s15 + $0x24] sm:$0xf] %vm1226_vm2, %v1872_v31  ;;  %v893_v41 = vadd.f32 %v2525_v37, %v829_v32  ;;  %1266 = vst.msk [vmem:[%s2535_s15 + $0x9c] sm:$0xf] %vm1226_vm2, %v1902_v34  ;;  %v830_v42 = vmul.f32 %v2519_v35, %v625_v39  ;;  %v1988_v43 = vpop.f32.mrb[23].mxu0  ;;  %v923_v44 = vadd.f32 %v2525_v37, %v859_v36  ;;  %v2048_v46 = vpop.f32.mrb[23].mxu1 }
 0x11e   : > { %v860_v45 = vmul.f32 %v2519_v35, %v745_v40 }
 0x11f   : > { %v950_v47 = vmax.f32 %v893_v41, 0.0  ;;  %v894_v48 = vadd.f32 %v2525_v37, %v830_v42  ;;  %v980_v49 = vmax.f32 %v923_v44, 0.0 }
 0x120   : > { %v924_v50 = vadd.f32 %v2525_v37, %v860_v45 }
 0x121   : > { %v1873_v51 = vpack.c.bf16 %v950_v47, %v950_v47  ;;  %v951_v52 = vmax.f32 %v894_v48, 0.0  ;;  %v1903_v53 = vpack.c.bf16 %v980_v49, %v980_v49 }
 0x122   : > { %v981_v54 = vmax.f32 %v924_v50, 0.0  ;;  %v630_v55 = vpop.f32.mrb[24].mxu0  ;;  %v750_v56 = vpop.f32.mrb[24].mxu1 }
 0x123   : > { %1237 = vst.msk [vmem:[%s2535_s15 + $0x28] sm:$0xf] %vm1226_vm2, %v1873_v51  ;;  %v1874_v57 = vpack.c.bf16 %v951_v52, %v951_v52  ;;  %1267 = vst.msk [vmem:[%s2535_s15 + $0xa0] sm:$0xf] %vm1226_vm2, %v1903_v53  ;;  %v831_v58 = vmul.f32 %v2519_v35, %v630_v55  ;;  %v1991_v59 = vpop.f32.mrb[25].mxu0  ;;  %v861_v61 = vmul.f32 %v2519_v35, %v750_v56  ;;  %v2051_v62 = vpop.f32.mrb[25].mxu1 }
 0x124   : > { %v1904_v60 = vpack.c.bf16 %v981_v54, %v981_v54  ;;  %v633_v63 = vpop.f32.mrb[26].mxu0  ;;  %v753_v0 = vpop.f32.mrb[26].mxu1 }
 0x125   : > { %1238 = vst.msk [vmem:[%s2535_s15 + $0x2c] sm:$0xf] %vm1226_vm2, %v1874_v57  ;;  %v895_v1 = vadd.f32 %v2525_v37, %v831_v58  ;;  %v832_v2 = vmul.f32 %v2519_v35, %v633_v63  ;;  %v1992_v3 = vpop.f32.mrb[27].mxu0  ;;  %v925_v4 = vadd.f32 %v2525_v37, %v861_v61  ;;  %v862_v5 = vmul.f32 %v2519_v35, %v753_v0  ;;  %v2052_v6 = vpop.f32.mrb[27].mxu1 }
 0x126   : > { %1268 = vst.msk [vmem:[%s2535_s15 + $0xa4] sm:$0xf] %vm1226_vm2, %v1904_v60 }
 0x127   : > { %v952_v7 = vmax.f32 %v895_v1, 0.0  ;;  %v896_v8 = vadd.f32 %v2525_v37, %v832_v2  ;;  %v982_v9 = vmax.f32 %v925_v4, 0.0  ;;  %v926_v10 = vadd.f32 %v2525_v37, %v862_v5 }
 0x129   : > { %v1875_v11 = vpack.c.bf16 %v952_v7, %v952_v7  ;;  %v953_v12 = vmax.f32 %v896_v8, 0.0  ;;  %v1905_v13 = vpack.c.bf16 %v982_v9, %v982_v9  ;;  %v983_v14 = vmax.f32 %v926_v10, 0.0 }
 0x12a   : > { %v638_v15 = vpop.f32.mrb[28].mxu0  ;;  %v758_v16 = vpop.f32.mrb[28].mxu1 }
 0x12b   : > { %1239 = vst.msk [vmem:[%s2535_s15 + $0x30] sm:$0xf] %vm1226_vm2, %v1875_v11  ;;  %v1876_v17 = vpack.c.bf16 %v953_v12, %v953_v12  ;;  %1269 = vst.msk [vmem:[%s2535_s15 + $0xa8] sm:$0xf] %vm1226_vm2, %v1905_v13  ;;  %v833_v18 = vmul.f32 %v2519_v35, %v638_v15  ;;  %v1995_v19 = vpop.f32.mrb[29].mxu0  ;;  %v1906_v20 = vpack.c.bf16 %v983_v14, %v983_v14  ;;  %v2055_v22 = vpop.f32.mrb[29].mxu1 }
 0x12c   : > { %v863_v21 = vmul.f32 %v2519_v35, %v758_v16  ;;  %v641_v23 = vpop.f32.mrb[30].mxu0  ;;  %v761_v24 = vpop.f32.mrb[30].mxu1 }
 0x12d   : > { %1240 = vst.msk [vmem:[%s2535_s15 + $0x34] sm:$0xf] %vm1226_vm2, %v1876_v17  ;;  %v897_v25 = vadd.f32 %v2525_v37, %v833_v18  ;;  %1270 = vst.msk [vmem:[%s2535_s15 + $0xac] sm:$0xf] %vm1226_vm2, %v1906_v20  ;;  %v834_v26 = vmul.f32 %v2519_v35, %v641_v23  ;;  %v1996_v27 = vpop.f32.mrb[31].mxu0  ;;  %v864_v29 = vmul.f32 %v2519_v35, %v761_v24  ;;  %v2056_v30 = vpop.f32.mrb[31].mxu1 }
 0x12e   : > { %v927_v28 = vadd.f32 %v2525_v37, %v863_v21 }
 0x12f   : > { %v954_v31 = vmax.f32 %v897_v25, 0.0  ;;  %v898_v32 = vadd.f32 %v2525_v37, %v834_v26  ;;  %v928_v34 = vadd.f32 %v2525_v37, %v864_v29 }
 0x130   : > { %v984_v33 = vmax.f32 %v927_v28, 0.0 }
 0x131   : > { %v1877_v36 = vpack.c.bf16 %v954_v31, %v954_v31  ;;  %v955_v38 = vmax.f32 %v898_v32, 0.0  ;;  %v985_v40 = vmax.f32 %v928_v34, 0.0 }
 0x132   : > { %v1907_v39 = vpack.c.bf16 %v984_v33, %v984_v33  ;;  %v646_v41 = vpop.f32.mrb[32].mxu0  ;;  %v766_v42 = vpop.f32.mrb[32].mxu1 }
 0x133   : > { %1241 = vst.msk [vmem:[%s2535_s15 + $0x38] sm:$0xf] %vm1226_vm2, %v1877_v36  ;;  %v1878_v43 = vpack.c.bf16 %v955_v38, %v955_v38  ;;  %v835_v44 = vmul.f32 %v2519_v35, %v646_v41  ;;  %v1999_v45 = vpop.f32.mrb[33].mxu0  ;;  %v1908_v46 = vpack.c.bf16 %v985_v40, %v985_v40  ;;  %v865_v47 = vmul.f32 %v2519_v35, %v766_v42  ;;  %v2059_v48 = vpop.f32.mrb[33].mxu1 }
 0x134   : > { %1271 = vst.msk [vmem:[%s2535_s15 + $0xb0] sm:$0xf] %vm1226_vm2, %v1907_v39  ;;  %v649_v49 = vpop.f32.mrb[34].mxu0  ;;  %v769_v50 = vpop.f32.mrb[34].mxu1 }
 0x135   : > { %1242 = vst.msk [vmem:[%s2535_s15 + $0x3c] sm:$0xf] %vm1226_vm2, %v1878_v43  ;;  %v899_v51 = vadd.f32 %v2525_v37, %v835_v44  ;;  %1272 = vst.msk [vmem:[%s2535_s15 + $0xb4] sm:$0xf] %vm1226_vm2, %v1908_v46  ;;  %v836_v52 = vmul.f32 %v2519_v35, %v649_v49  ;;  %v2000_v53 = vpop.f32.mrb[35].mxu0  ;;  %v929_v54 = vadd.f32 %v2525_v37, %v865_v47  ;;  %v2060_v56 = vpop.f32.mrb[35].mxu1 }
 0x136   : > { %v866_v55 = vmul.f32 %v2519_v35, %v769_v50 }
 0x137   : > { %v956_v57 = vmax.f32 %v899_v51, 0.0  ;;  %v900_v58 = vadd.f32 %v2525_v37, %v836_v52  ;;  %v986_v59 = vmax.f32 %v929_v54, 0.0 }
 0x138   : > { %v930_v60 = vadd.f32 %v2525_v37, %v866_v55 }
 0x139   : > { %v1879_v61 = vpack.c.bf16 %v956_v57, %v956_v57  ;;  %v957_v62 = vmax.f32 %v900_v58, 0.0  ;;  %v1909_v63 = vpack.c.bf16 %v986_v59, %v986_v59 }
 0x13a   : > { %v987_v0 = vmax.f32 %v930_v60, 0.0  ;;  %v654_v1 = vpop.f32.mrb[36].mxu0  ;;  %v774_v2 = vpop.f32.mrb[36].mxu1 }
 0x13b   : > { %1243 = vst.msk [vmem:[%s2535_s15 + $0x40] sm:$0xf] %vm1226_vm2, %v1879_v61  ;;  %v1880_v3 = vpack.c.bf16 %v957_v62, %v957_v62  ;;  %1273 = vst.msk [vmem:[%s2535_s15 + $0xb8] sm:$0xf] %vm1226_vm2, %v1909_v63  ;;  %v837_v4 = vmul.f32 %v2519_v35, %v654_v1  ;;  %v2003_v5 = vpop.f32.mrb[37].mxu0  ;;  %v867_v7 = vmul.f32 %v2519_v35, %v774_v2  ;;  %v2063_v8 = vpop.f32.mrb[37].mxu1 }
 0x13c   : > { %v1910_v6 = vpack.c.bf16 %v987_v0, %v987_v0  ;;  %v657_v9 = vpop.f32.mrb[38].mxu0  ;;  %v777_v10 = vpop.f32.mrb[38].mxu1 }
 0x13d   : > { %1244 = vst.msk [vmem:[%s2535_s15 + $0x44] sm:$0xf] %vm1226_vm2, %v1880_v3  ;;  %v901_v11 = vadd.f32 %v2525_v37, %v837_v4  ;;  %v838_v12 = vmul.f32 %v2519_v35, %v657_v9  ;;  %v2004_v13 = vpop.f32.mrb[39].mxu0  ;;  %v931_v14 = vadd.f32 %v2525_v37, %v867_v7  ;;  %v868_v15 = vmul.f32 %v2519_v35, %v777_v10  ;;  %v2064_v16 = vpop.f32.mrb[39].mxu1 }
 0x13e   : > { %1274 = vst.msk [vmem:[%s2535_s15 + $0xbc] sm:$0xf] %vm1226_vm2, %v1910_v6 }
 0x13f   : > { %v958_v17 = vmax.f32 %v901_v11, 0.0  ;;  %v902_v18 = vadd.f32 %v2525_v37, %v838_v12  ;;  %v988_v19 = vmax.f32 %v931_v14, 0.0  ;;  %v932_v20 = vadd.f32 %v2525_v37, %v868_v15 }
 0x141   : > { %v1881_v21 = vpack.c.bf16 %v958_v17, %v958_v17  ;;  %v959_v22 = vmax.f32 %v902_v18, 0.0  ;;  %v1911_v23 = vpack.c.bf16 %v988_v19, %v988_v19  ;;  %v989_v24 = vmax.f32 %v932_v20, 0.0 }
 0x142   : > { %v662_v25 = vpop.f32.mrb[40].mxu0  ;;  %v782_v26 = vpop.f32.mrb[40].mxu1 }
 0x143   : > { %1245 = vst.msk [vmem:[%s2535_s15 + $0x48] sm:$0xf] %vm1226_vm2, %v1881_v21  ;;  %v1882_v27 = vpack.c.bf16 %v959_v22, %v959_v22  ;;  %1275 = vst.msk [vmem:[%s2535_s15 + $0xc0] sm:$0xf] %vm1226_vm2, %v1911_v23  ;;  %v839_v28 = vmul.f32 %v2519_v35, %v662_v25  ;;  %v2007_v29 = vpop.f32.mrb[41].mxu0  ;;  %v1912_v30 = vpack.c.bf16 %v989_v24, %v989_v24  ;;  %v2067_v32 = vpop.f32.mrb[41].mxu1 }
 0x144   : > { %v869_v31 = vmul.f32 %v2519_v35, %v782_v26  ;;  %v665_v33 = vpop.f32.mrb[42].mxu0  ;;  %v785_v34 = vpop.f32.mrb[42].mxu1 }
 0x145   : > { %1246 = vst.msk [vmem:[%s2535_s15 + $0x4c] sm:$0xf] %vm1226_vm2, %v1882_v27  ;;  %v903_v36 = vadd.f32 %v2525_v37, %v839_v28  ;;  %1276 = vst.msk [vmem:[%s2535_s15 + $0xc4] sm:$0xf] %vm1226_vm2, %v1912_v30  ;;  %v840_v38 = vmul.f32 %v2519_v35, %v665_v33  ;;  %v2008_v39 = vpop.f32.mrb[43].mxu0  ;;  %v870_v41 = vmul.f32 %v2519_v35, %v785_v34  ;;  %v2068_v42 = vpop.f32.mrb[43].mxu1 }
 0x146   : > { %v933_v40 = vadd.f32 %v2525_v37, %v869_v31 }
 0x147   : > { %v960_v43 = vmax.f32 %v903_v36, 0.0  ;;  %v904_v44 = vadd.f32 %v2525_v37, %v840_v38  ;;  %v934_v46 = vadd.f32 %v2525_v37, %v870_v41 }
 0x148   : > { %v990_v45 = vmax.f32 %v933_v40, 0.0 }
 0x149   : > { %v1883_v47 = vpack.c.bf16 %v960_v43, %v960_v43  ;;  %v961_v48 = vmax.f32 %v904_v44, 0.0  ;;  %v991_v50 = vmax.f32 %v934_v46, 0.0 }
 0x14a   : > { %v1913_v49 = vpack.c.bf16 %v990_v45, %v990_v45  ;;  %v670_v51 = vpop.f32.mrb[44].mxu0  ;;  %v790_v52 = vpop.f32.mrb[44].mxu1 }
 0x14b   : > { %1247 = vst.msk [vmem:[%s2535_s15 + $0x50] sm:$0xf] %vm1226_vm2, %v1883_v47  ;;  %v1884_v53 = vpack.c.bf16 %v961_v48, %v961_v48  ;;  %v841_v54 = vmul.f32 %v2519_v35, %v670_v51  ;;  %v2011_v55 = vpop.f32.mrb[45].mxu0  ;;  %v1914_v56 = vpack.c.bf16 %v991_v50, %v991_v50  ;;  %v871_v57 = vmul.f32 %v2519_v35, %v790_v52  ;;  %v2071_v58 = vpop.f32.mrb[45].mxu1 }
 0x14c   : > { %1277 = vst.msk [vmem:[%s2535_s15 + $0xc8] sm:$0xf] %vm1226_vm2, %v1913_v49  ;;  %v673_v59 = vpop.f32.mrb[46].mxu0  ;;  %v793_v60 = vpop.f32.mrb[46].mxu1 }
 0x14d   : > { %1248 = vst.msk [vmem:[%s2535_s15 + $0x54] sm:$0xf] %vm1226_vm2, %v1884_v53  ;;  %v905_v61 = vadd.f32 %v2525_v37, %v841_v54  ;;  %1278 = vst.msk [vmem:[%s2535_s15 + $0xcc] sm:$0xf] %vm1226_vm2, %v1914_v56  ;;  %v842_v62 = vmul.f32 %v2519_v35, %v673_v59  ;;  %v2012_v63 = vpop.f32.mrb[47].mxu0  ;;  %v935_v0 = vadd.f32 %v2525_v37, %v871_v57  ;;  %v2072_v2 = vpop.f32.mrb[47].mxu1 }
 0x14e   : > { %v872_v1 = vmul.f32 %v2519_v35, %v793_v60 }
 0x14f   : > { %v962_v3 = vmax.f32 %v905_v61, 0.0  ;;  %v906_v4 = vadd.f32 %v2525_v37, %v842_v62  ;;  %v992_v5 = vmax.f32 %v935_v0, 0.0 }
 0x150   : > { %v936_v6 = vadd.f32 %v2525_v37, %v872_v1 }
 0x151   : > { %v1885_v7 = vpack.c.bf16 %v962_v3, %v962_v3  ;;  %v963_v8 = vmax.f32 %v906_v4, 0.0  ;;  %v1915_v9 = vpack.c.bf16 %v992_v5, %v992_v5 }
 0x152   : > { %v993_v10 = vmax.f32 %v936_v6, 0.0  ;;  %v678_v11 = vpop.f32.mrb[48].mxu0  ;;  %v798_v12 = vpop.f32.mrb[48].mxu1 }
 0x153   : > { %1249 = vst.msk [vmem:[%s2535_s15 + $0x58] sm:$0xf] %vm1226_vm2, %v1885_v7  ;;  %v1886_v13 = vpack.c.bf16 %v963_v8, %v963_v8  ;;  %1279 = vst.msk [vmem:[%s2535_s15 + $0xd0] sm:$0xf] %vm1226_vm2, %v1915_v9  ;;  %v843_v14 = vmul.f32 %v2519_v35, %v678_v11  ;;  %v2015_v15 = vpop.f32.mrb[49].mxu0  ;;  %v873_v17 = vmul.f32 %v2519_v35, %v798_v12  ;;  %v2075_v18 = vpop.f32.mrb[49].mxu1 }
 0x154   : > { %v1916_v16 = vpack.c.bf16 %v993_v10, %v993_v10  ;;  %v681_v19 = vpop.f32.mrb[50].mxu0  ;;  %v801_v20 = vpop.f32.mrb[50].mxu1 }
 0x155   : > { %1250 = vst.msk [vmem:[%s2535_s15 + $0x5c] sm:$0xf] %vm1226_vm2, %v1886_v13  ;;  %v907_v21 = vadd.f32 %v2525_v37, %v843_v14  ;;  %v844_v22 = vmul.f32 %v2519_v35, %v681_v19  ;;  %v2016_v23 = vpop.f32.mrb[51].mxu0  ;;  %v937_v24 = vadd.f32 %v2525_v37, %v873_v17  ;;  %v874_v25 = vmul.f32 %v2519_v35, %v801_v20  ;;  %v2076_v26 = vpop.f32.mrb[51].mxu1 }
 0x156   : > { %1280 = vst.msk [vmem:[%s2535_s15 + $0xd4] sm:$0xf] %vm1226_vm2, %v1916_v16 }
 0x157   : > { %v964_v27 = vmax.f32 %v907_v21, 0.0  ;;  %v908_v28 = vadd.f32 %v2525_v37, %v844_v22  ;;  %v994_v29 = vmax.f32 %v937_v24, 0.0  ;;  %v938_v30 = vadd.f32 %v2525_v37, %v874_v25 }
 0x159   : > { %v1887_v31 = vpack.c.bf16 %v964_v27, %v964_v27  ;;  %v965_v32 = vmax.f32 %v908_v28, 0.0  ;;  %v1917_v33 = vpack.c.bf16 %v994_v29, %v994_v29  ;;  %v995_v34 = vmax.f32 %v938_v30, 0.0 }
 0x15a   : > { %v686_v36 = vpop.f32.mrb[52].mxu0  ;;  %v806_v38 = vpop.f32.mrb[52].mxu1 }
 0x15b   : > { %1251 = vst.msk [vmem:[%s2535_s15 + $0x60] sm:$0xf] %vm1226_vm2, %v1887_v31  ;;  %v1888_v39 = vpack.c.bf16 %v965_v32, %v965_v32  ;;  %1281 = vst.msk [vmem:[%s2535_s15 + $0xd8] sm:$0xf] %vm1226_vm2, %v1917_v33  ;;  %v845_v40 = vmul.f32 %v2519_v35, %v686_v36  ;;  %v2019_v41 = vpop.f32.mrb[53].mxu0  ;;  %v1918_v42 = vpack.c.bf16 %v995_v34, %v995_v34  ;;  %v2079_v44 = vpop.f32.mrb[53].mxu1 }
 0x15c   : > { %v875_v43 = vmul.f32 %v2519_v35, %v806_v38  ;;  %v689_v45 = vpop.f32.mrb[54].mxu0  ;;  %v809_v46 = vpop.f32.mrb[54].mxu1 }
 0x15d   : > { %1252 = vst.msk [vmem:[%s2535_s15 + $0x64] sm:$0xf] %vm1226_vm2, %v1888_v39  ;;  %v909_v47 = vadd.f32 %v2525_v37, %v845_v40  ;;  %1282 = vst.msk [vmem:[%s2535_s15 + $0xdc] sm:$0xf] %vm1226_vm2, %v1918_v42  ;;  %v846_v48 = vmul.f32 %v2519_v35, %v689_v45  ;;  %v2020_v49 = vpop.f32.mrb[55].mxu0  ;;  %v2080_v51 = vpop.f32.mrb[55].mxu1 }
 0x15e   : > { %v939_v50 = vadd.f32 %v2525_v37, %v875_v43 }
 0x15f   : > { %v966_v52 = vmax.f32 %v909_v47, 0.0  ;;  %v910_v53 = vadd.f32 %v2525_v37, %v846_v48 }
 0x160   : > { %v996_v54 = vmax.f32 %v939_v50, 0.0 }
 0x161   : > { %v1889_v55 = vpack.c.bf16 %v966_v52, %v966_v52  ;;  %v967_v56 = vmax.f32 %v910_v53, 0.0 }
 0x162   : > { %v1919_v57 = vpack.c.bf16 %v996_v54, %v996_v54  ;;  %v694_v58 = vpop.f32.mrb[56].mxu0 }
 0x163   : > { %1253 = vst.msk [vmem:[%s2535_s15 + $0x68] sm:$0xf] %vm1226_vm2, %v1889_v55  ;;  %v1890_v59 = vpack.c.bf16 %v967_v56, %v967_v56  ;;  %v847_v60 = vmul.f32 %v2519_v35, %v694_v58  ;;  %v2023_v61 = vpop.f32.mrb[57].mxu0 }
 0x164   : > { %1283 = vst.msk [vmem:[%s2535_s15 + $0xe0] sm:$0xf] %vm1226_vm2, %v1919_v57  ;;  %v697_v62 = vpop.f32.mrb[58].mxu0 }
 0x165   : > { %1254 = vst.msk [vmem:[%s2535_s15 + $0x6c] sm:$0xf] %vm1226_vm2, %v1890_v59  ;;  %v911_v63 = vadd.f32 %v2525_v37, %v847_v60  ;;  %v848_v0 = vmul.f32 %v2519_v35, %v697_v62  ;;  %v2024_v1 = vpop.f32.mrb[59].mxu0 }
 0x167   : > { %v968_v2 = vmax.f32 %v911_v63, 0.0  ;;  %v912_v3 = vadd.f32 %v2525_v37, %v848_v0  ;;  %1290 = sbr.rel (!%p2361_p4) target bundleno = 465 (0x1d1), region = 40 }
 0x169   : > { %v1891_v4 = vpack.c.bf16 %v968_v2, %v968_v2  ;;  %v969_v5 = vmax.f32 %v912_v3, 0.0 }
 0x16b   : > { %1255 = vst.msk [vmem:[%s2535_s15 + $0x70] sm:$0xf] %vm1226_vm2, %v1891_v4  ;;  %v1892_v6 = vpack.c.bf16 %v969_v5, %v969_v5 }
 0x16d   : > { %1256 = vst.msk [vmem:[%s2535_s15 + $0x74] sm:$0xf] %vm1226_vm2, %v1892_v6 }
 0x16e   : > { %s2950_s26 = smov (!%p1293_p8, %s1292_s26), 57 }
 0x16f   : > { %s1851_s6 = sshll.u32 %s2950_s26, 6 }
 0x170   : > { %p1854_p9 = scmp.eq.s32.totalorder %s1851_s6, 0 }
 0x171   : > { %2217 = sdivrem.u32 (!%p1854_p9), %s2950_s26, 57 }
 0x172   : > { %1301 = sbr.rel (%p1854_p9) target bundleno = 465 (0x1d1), region = 44 }
 0x17a   : > { %s2770_s23 = spop.drf %2217 }
 0x17b   : > { %p1855_p10 = scmp.le.s32.totalorder %s2770_s23, 0 }
 0x17c   : > { %s2943_s18 = smov (!%p1855_p10), %s2764_s5  ;;  %s2944_s28 = smov (!%p1855_p10), %s2535_s15 }
 0x17d   : > { %1680 = sbr.rel (%p1855_p10) target bundleno = 436 (0x1b4), region = 116  ;;  %s2779_s7 = smov (!%p1855_p10), 0  }
 0x17e   : > { %s2781_s8 = smov (!%p1855_p10), 0  }
 0x184 LB: >> { %v1318_v35 = vld [vmem:[%s2283_s28] sm:$0xf]  ;;  %v1320_v37 = vld [vmem:[%s2283_s28 + $0x4] sm:$0xf]  ;;  %v1322_v7 = vld [vmem:[%s2283_s28 + $0x8] sm:$0xf]  ;;  %s2291_s8 = sphi %s2781_s8, %s1312_s8   ;;  %s2287_s7 = sphi %s2779_s7, %s2945_s7   ;;  %s2283_s28 = sphi %s2944_s28, %s1437_s28   ;;  %s2279_s18 = sphi %s2943_s18, %s1438_s18  }
 0x185   : >> { %1319 = vst [vmem:[%s2279_s18] sm:$0xf] %v1318_v35  ;;  %1321 = vst [vmem:[%s2279_s18 + $0x4] sm:$0xf] %v1320_v37  ;;  %v1324_v8 = vld [vmem:[%s2283_s28 + $0xc] sm:$0xf]  ;;  %s1432_s9 = sadd.s32 1, %s2287_s7 }
 0x186   : >> { %1323 = vst [vmem:[%s2279_s18 + $0x8] sm:$0xf] %v1322_v7  ;;  %v1326_v9 = vld [vmem:[%s2283_s28 + $0x10] sm:$0xf]  ;;  %v1328_v10 = vld [vmem:[%s2283_s28 + $0x14] sm:$0xf]  ;;  %p1433_p11 = scmp.ge.s32.totalorder %s1432_s9, %s2770_s23 }
 0x187   : >> { %1325 = vst [vmem:[%s2279_s18 + $0xc] sm:$0xf] %v1324_v8  ;;  %1327 = vst [vmem:[%s2279_s18 + $0x10] sm:$0xf] %v1326_v9  ;;  %v1330_v11 = vld [vmem:[%s2283_s28 + $0x18] sm:$0xf] }
 0x188   : >> { %1329 = vst [vmem:[%s2279_s18 + $0x14] sm:$0xf] %v1328_v10  ;;  %v1332_v12 = vld [vmem:[%s2283_s28 + $0x1c] sm:$0xf]  ;;  %v1334_v13 = vld [vmem:[%s2283_s28 + $0x20] sm:$0xf] }
 0x189   : >> { %1331 = vst [vmem:[%s2279_s18 + $0x18] sm:$0xf] %v1330_v11  ;;  %1333 = vst [vmem:[%s2279_s18 + $0x1c] sm:$0xf] %v1332_v12  ;;  %v1336_v14 = vld [vmem:[%s2283_s28 + $0x24] sm:$0xf] }
 0x18a   : >> { %1335 = vst [vmem:[%s2279_s18 + $0x20] sm:$0xf] %v1334_v13  ;;  %v1338_v15 = vld [vmem:[%s2283_s28 + $0x28] sm:$0xf]  ;;  %v1340_v16 = vld [vmem:[%s2283_s28 + $0x2c] sm:$0xf] }
 0x18b   : >> { %1337 = vst [vmem:[%s2279_s18 + $0x24] sm:$0xf] %v1336_v14  ;;  %1339 = vst [vmem:[%s2279_s18 + $0x28] sm:$0xf] %v1338_v15  ;;  %v1342_v17 = vld [vmem:[%s2283_s28 + $0x30] sm:$0xf] }
 0x18c   : >> { %1341 = vst [vmem:[%s2279_s18 + $0x2c] sm:$0xf] %v1340_v16  ;;  %v1344_v18 = vld [vmem:[%s2283_s28 + $0x34] sm:$0xf]  ;;  %v1346_v19 = vld [vmem:[%s2283_s28 + $0x38] sm:$0xf] }
 0x18d   : >> { %1343 = vst [vmem:[%s2279_s18 + $0x30] sm:$0xf] %v1342_v17  ;;  %1345 = vst [vmem:[%s2279_s18 + $0x34] sm:$0xf] %v1344_v18  ;;  %v1348_v20 = vld [vmem:[%s2283_s28 + $0x3c] sm:$0xf] }
 0x18e   : >> { %1347 = vst [vmem:[%s2279_s18 + $0x38] sm:$0xf] %v1346_v19  ;;  %v1350_v21 = vld [vmem:[%s2283_s28 + $0x40] sm:$0xf]  ;;  %v1352_v22 = vld [vmem:[%s2283_s28 + $0x44] sm:$0xf] }
 0x18f   : >> { %1349 = vst [vmem:[%s2279_s18 + $0x3c] sm:$0xf] %v1348_v20  ;;  %1351 = vst [vmem:[%s2279_s18 + $0x40] sm:$0xf] %v1350_v21  ;;  %v1354_v23 = vld [vmem:[%s2283_s28 + $0x48] sm:$0xf] }
 0x190   : >> { %1353 = vst [vmem:[%s2279_s18 + $0x44] sm:$0xf] %v1352_v22  ;;  %v1356_v24 = vld [vmem:[%s2283_s28 + $0x4c] sm:$0xf]  ;;  %v1358_v25 = vld [vmem:[%s2283_s28 + $0x50] sm:$0xf] }
 0x191   : >> { %1355 = vst [vmem:[%s2279_s18 + $0x48] sm:$0xf] %v1354_v23  ;;  %1357 = vst [vmem:[%s2279_s18 + $0x4c] sm:$0xf] %v1356_v24  ;;  %v1360_v26 = vld [vmem:[%s2283_s28 + $0x54] sm:$0xf] }
 0x192   : >> { %1359 = vst [vmem:[%s2279_s18 + $0x50] sm:$0xf] %v1358_v25  ;;  %v1362_v27 = vld [vmem:[%s2283_s28 + $0x58] sm:$0xf]  ;;  %v1364_v28 = vld [vmem:[%s2283_s28 + $0x5c] sm:$0xf] }
 0x193   : >> { %1361 = vst [vmem:[%s2279_s18 + $0x54] sm:$0xf] %v1360_v26  ;;  %1363 = vst [vmem:[%s2279_s18 + $0x58] sm:$0xf] %v1362_v27  ;;  %v1366_v29 = vld [vmem:[%s2283_s28 + $0x60] sm:$0xf] }
 0x194   : >> { %1365 = vst [vmem:[%s2279_s18 + $0x5c] sm:$0xf] %v1364_v28  ;;  %v1368_v30 = vld [vmem:[%s2283_s28 + $0x64] sm:$0xf]  ;;  %v1370_v31 = vld [vmem:[%s2283_s28 + $0x68] sm:$0xf] }
 0x195   : >> { %1367 = vst [vmem:[%s2279_s18 + $0x60] sm:$0xf] %v1366_v29  ;;  %1369 = vst [vmem:[%s2279_s18 + $0x64] sm:$0xf] %v1368_v30  ;;  %v1372_v32 = vld [vmem:[%s2283_s28 + $0x6c] sm:$0xf] }
 0x196   : >> { %1371 = vst [vmem:[%s2279_s18 + $0x68] sm:$0xf] %v1370_v31  ;;  %v1374_v33 = vld [vmem:[%s2283_s28 + $0x70] sm:$0xf]  ;;  %v1376_v34 = vld [vmem:[%s2283_s28 + $0x74] sm:$0xf] }
 0x197   : >> { %1373 = vst [vmem:[%s2279_s18 + $0x6c] sm:$0xf] %v1372_v32  ;;  %1375 = vst [vmem:[%s2279_s18 + $0x70] sm:$0xf] %v1374_v33  ;;  %v1378_v36 = vld [vmem:[%s2283_s28 + $0x78] sm:$0xf] }
 0x198   : >> { %1377 = vst [vmem:[%s2279_s18 + $0x74] sm:$0xf] %v1376_v34  ;;  %v1380_v38 = vld [vmem:[%s2283_s28 + $0x7c] sm:$0xf]  ;;  %v1382_v39 = vld [vmem:[%s2283_s28 + $0x80] sm:$0xf] }
 0x199   : >> { %1379 = vst [vmem:[%s2279_s18 + $0x78] sm:$0xf] %v1378_v36  ;;  %1381 = vst [vmem:[%s2279_s18 + $0x7c] sm:$0xf] %v1380_v38  ;;  %v1384_v40 = vld [vmem:[%s2283_s28 + $0x84] sm:$0xf] }
 0x19a   : >> { %1383 = vst [vmem:[%s2279_s18 + $0x80] sm:$0xf] %v1382_v39  ;;  %v1386_v41 = vld [vmem:[%s2283_s28 + $0x88] sm:$0xf]  ;;  %v1388_v42 = vld [vmem:[%s2283_s28 + $0x8c] sm:$0xf] }
 0x19b   : >> { %1385 = vst [vmem:[%s2279_s18 + $0x84] sm:$0xf] %v1384_v40  ;;  %1387 = vst [vmem:[%s2279_s18 + $0x88] sm:$0xf] %v1386_v41  ;;  %v1390_v43 = vld [vmem:[%s2283_s28 + $0x90] sm:$0xf] }
 0x19c   : >> { %1389 = vst [vmem:[%s2279_s18 + $0x8c] sm:$0xf] %v1388_v42  ;;  %v1392_v44 = vld [vmem:[%s2283_s28 + $0x94] sm:$0xf]  ;;  %v1394_v45 = vld [vmem:[%s2283_s28 + $0x98] sm:$0xf] }
 0x19d   : >> { %1391 = vst [vmem:[%s2279_s18 + $0x90] sm:$0xf] %v1390_v43  ;;  %1393 = vst [vmem:[%s2279_s18 + $0x94] sm:$0xf] %v1392_v44  ;;  %v1396_v46 = vld [vmem:[%s2283_s28 + $0x9c] sm:$0xf] }
 0x19e   : >> { %1395 = vst [vmem:[%s2279_s18 + $0x98] sm:$0xf] %v1394_v45  ;;  %v1398_v47 = vld [vmem:[%s2283_s28 + $0xa0] sm:$0xf]  ;;  %v1400_v48 = vld [vmem:[%s2283_s28 + $0xa4] sm:$0xf] }
 0x19f   : >> { %1397 = vst [vmem:[%s2279_s18 + $0x9c] sm:$0xf] %v1396_v46  ;;  %1399 = vst [vmem:[%s2279_s18 + $0xa0] sm:$0xf] %v1398_v47  ;;  %v1402_v49 = vld [vmem:[%s2283_s28 + $0xa8] sm:$0xf] }
 0x1a0   : >> { %1401 = vst [vmem:[%s2279_s18 + $0xa4] sm:$0xf] %v1400_v48  ;;  %v1404_v50 = vld [vmem:[%s2283_s28 + $0xac] sm:$0xf]  ;;  %v1406_v51 = vld [vmem:[%s2283_s28 + $0xb0] sm:$0xf] }
 0x1a1   : >> { %1403 = vst [vmem:[%s2279_s18 + $0xa8] sm:$0xf] %v1402_v49  ;;  %1405 = vst [vmem:[%s2279_s18 + $0xac] sm:$0xf] %v1404_v50  ;;  %v1408_v52 = vld [vmem:[%s2283_s28 + $0xb4] sm:$0xf] }
 0x1a2   : >> { %1407 = vst [vmem:[%s2279_s18 + $0xb0] sm:$0xf] %v1406_v51  ;;  %v1410_v53 = vld [vmem:[%s2283_s28 + $0xb8] sm:$0xf]  ;;  %v1412_v54 = vld [vmem:[%s2283_s28 + $0xbc] sm:$0xf] }
 0x1a3   : >> { %1409 = vst [vmem:[%s2279_s18 + $0xb4] sm:$0xf] %v1408_v52  ;;  %1411 = vst [vmem:[%s2279_s18 + $0xb8] sm:$0xf] %v1410_v53  ;;  %v1414_v55 = vld [vmem:[%s2283_s28 + $0xc0] sm:$0xf] }
 0x1a4   : >> { %1413 = vst [vmem:[%s2279_s18 + $0xbc] sm:$0xf] %v1412_v54  ;;  %v1416_v56 = vld [vmem:[%s2283_s28 + $0xc4] sm:$0xf]  ;;  %v1418_v57 = vld [vmem:[%s2283_s28 + $0xc8] sm:$0xf] }
 0x1a5   : >> { %1415 = vst [vmem:[%s2279_s18 + $0xc0] sm:$0xf] %v1414_v55  ;;  %1417 = vst [vmem:[%s2279_s18 + $0xc4] sm:$0xf] %v1416_v56  ;;  %v1420_v58 = vld [vmem:[%s2283_s28 + $0xcc] sm:$0xf] }
 0x1a6   : >> { %1419 = vst [vmem:[%s2279_s18 + $0xc8] sm:$0xf] %v1418_v57  ;;  %v1422_v59 = vld [vmem:[%s2283_s28 + $0xd0] sm:$0xf]  ;;  %v1424_v60 = vld [vmem:[%s2283_s28 + $0xd4] sm:$0xf] }
 0x1a7   : >> { %1421 = vst [vmem:[%s2279_s18 + $0xcc] sm:$0xf] %v1420_v58  ;;  %1423 = vst [vmem:[%s2279_s18 + $0xd0] sm:$0xf] %v1422_v59  ;;  %v1426_v61 = vld [vmem:[%s2283_s28 + $0xd8] sm:$0xf] }
 0x1a8   : >> { %1425 = vst [vmem:[%s2279_s18 + $0xd4] sm:$0xf] %v1424_v60  ;;  %v1428_v62 = vld [vmem:[%s2283_s28 + $0xdc] sm:$0xf]  ;;  %v1430_v63 = vld [vmem:[%s2283_s28 + $0xe0] sm:$0xf] }
 0x1a9   : >> { %1427 = vst [vmem:[%s2279_s18 + $0xd8] sm:$0xf] %v1426_v61  ;;  %1429 = vst [vmem:[%s2279_s18 + $0xdc] sm:$0xf] %v1428_v62  ;;  %s2952_s9 = smov (%p1433_p11, %s1432_s9), 0  ;;  %s1312_s8 = sadd.s32 1, %s2291_s8  }
 0x1aa   : >> { %1431 = vst [vmem:[%s2279_s18 + $0xe0] sm:$0xf] %v1430_v63  ;;  %s1435_s10 = smul.u32 228, %s2952_s9  ;;  %p1311_p12 = scmp.ge.s32.totalorder %s1312_s8, %s2770_s23 }
 0x1ab   : >> { %s2945_s7 = smov %s2952_s9 }
 0x1ac   : >> { %s1437_s28 = scalar_lea.vmem %s2535_s15, %s1435_s10 [#allocation2]   ;;  %s1438_s18 = scalar_lea.vmem %s2764_s5, %s1435_s10  }
 0x1ad   : > { %1314 = sbr.rel (!%p1311_p12) target bundleno = 388 (0x184), region = 122 }
 0x1b4 PF: > { %2219 = sdivrem.u32 %s2950_s26, 57 }
 0x1b5   : > { %s1856_s11 = smul.u32 228, %s2770_s23 }
 0x1b7   : > { %s1443_s12 = scalar_lea.vmem %s2535_s15, %s1856_s11 [#allocation2]   ;;  %s1445_s13 = scalar_lea.vmem %s2764_s5, %s1856_s11  }
 0x1bd   : > { %s2220_s14 = spop.drf %2219 }
 0x1be   : > { %p1858_p13 = scmp.le.s32.totalorder %s2220_s14, 0 }
 0x1bf   : > { %s2293_s17 = smov (!%p1858_p13), %s1445_s13   ;;  %s2297_s20 = smov (!%p1858_p13), %s1443_s12  }
 0x1c0   : > { %1694 = sbr.rel (%p1858_p13) target bundleno = 465 (0x1d1), region = 127  ;;  %s2301_s21 = smov (!%p1858_p13), 0  }
 0x1c1   : > { %s2305_s24 = smov (!%p1858_p13), 0  }
 0x1c7 LB: >> { %v1455_v0 = vld [vmem:[%s2299_s20] sm:$0xf]  ;;  %s1457_s25 = sadd.s32 1, %s2303_s21  ;;  %s1449_s24 = sadd.s32 1, %s2307_s24   ;;  %s2307_s24 = sphi %s2305_s24, %s1449_s24   ;;  %s2303_s21 = sphi %s2301_s21, %s2302_s21   ;;  %s2299_s20 = sphi %s2297_s20, %s1462_s20   ;;  %s2295_s17 = sphi %s2293_s17, %s1463_s17  }
 0x1c8   : >> { %1456 = vst [vmem:[%s2295_s17] sm:$0xf] %v1455_v0  ;;  %p1458_p0 = scmp.ge.s32.totalorder %s1457_s25, %s2220_s14  ;;  %p1448_p1 = scmp.ge.s32.totalorder %s1449_s24, %s2220_s14 }
 0x1ca   : >> { %s2954_s25 = smov (%p1458_p0, %s1457_s25), 0  ;;  %1451 = sbr.rel (!%p1448_p1) target bundleno = 455 (0x1c7), region = 133 }
 0x1cb   : >> { %s1859_s15 = sshll.u32 %s2954_s25, 2  ;;  %s2302_s21 = smov %s2954_s25  }
 0x1cc   : >> { %s1462_s20 = scalar_lea.vmem %s1443_s12, %s1859_s15 [#allocation2]   ;;  %s1463_s17 = scalar_lea.vmem %s1445_s13, %s1859_s15  }
 0x1d1 PF: > { %p11_p2 = scmp.ge.s32.totalorder %s2351_s19, 6   ;;  %s2946_s15 = smov %s2271_s16 }
 0x1d2   : > { %s2947_s16 = smov %s2359_s22  ;;  %s2948_s17 = smov %s2351_s19 }
 0x1d3   :  { %13 = sbr.rel (!%p11_p2) target bundleno = 2 (0x2), region = 144 }

// kernel: forward.5
= control target key start
LH: loop header
LB: loop body
LE: loop exit
PB: predicated region body
PF: predicated region fallthrough
CT: control target
= control target key end

     0   :  { %v1287_v0 = vmov 0.0   ;;  %vm1288_vm0 = vmmov 0   ;;  %vm230_vm1 = vcmask 654336   ;;  %vm896_vm2 = vcmask 125952   ;;  %s1793_s1 = inlined_call_operand.vmem [shape: bf16[80,16], index: 1, kind: input, shape index: {}]   ;;  %s1794_s0 = inlined_call_operand.vmem [shape: bf16[392,80], index: 0, kind: input, shape index: {}]   ;;  %s1795_s2 = inlined_call_operand.vmem [shape: f32[1,16], index: 2, kind: input, shape index: {}]   ;;  %s1796_s3 = inlined_call_operand.vmem [shape: f32[1,16], index: 3, kind: input, shape index: {}]   ;;  %s1797_s4 = inlined_call_operand.vmem [shape: bf16[392,16], index: 4, kind: output, shape index: {}]  }
   0x1   :  { %1135 = vmatprep.subr.bf16.mxu0 %v1287_v0  ;;  %v1257_v1 = vld [vmem:[%s1793_s1] sm:$0xff]   ;;  %1245 = vmatprep.subr.bf16.mxu1 %v1287_v0  ;;  %v1258_v2 = vld [vmem:[%s1793_s1 + $0x8] sm:$0xff]   ;;  %v1259_v3 = vld [vmem:[%s1793_s1 + $0x10] sm:$0xff]  }
   0x2   :  { %1145 = vmatprep.mubr.msk.bf16.mxu0 %vm1288_vm0, %v1287_v0  ;;  %1197 = vmatprep.mubr.msk.bf16.mxu1 %vm1288_vm0, %v1287_v0  ;;  %v1260_v4 = vld [vmem:[%s1793_s1 + $0x18] sm:$0xff]   ;;  %v1261_v5 = vld [vmem:[%s1793_s1 + $0x20] sm:$0xff]   ;;  %v1263_v7 = vld [vmem:[%s1794_s0 + $0x68] sm:$0xff]  }
   0x3   :  { %1136 = vmatpush3.bf16.msra.mxu0 %v1257_v1  ;;  %1250 = vmatpush3.bf16.msra.mxu1 %v1257_v1  ;;  %v1262_v6 = vld [vmem:[%s1794_s0] sm:$0xff]   ;;  %v1264_v8 = vld [vmem:[%s1794_s0 + $0x8] sm:$0xff]   ;;  %v1265_v9 = vld [vmem:[%s1794_s0 + $0x70] sm:$0xff]  }
   0x4   :  { %1137 = vmatprep.subr.bf16.mxu0 %v1287_v0  ;;  %1246 = vmatprep.subr.bf16.mxu1 %v1287_v0  ;;  %v1266_v10 = vld [vmem:[%s1794_s0 + $0x10] sm:$0xff]   ;;  %v1267_v11 = vld [vmem:[%s1794_s0 + $0x78] sm:$0xff]   ;;  %v1269_v13 = vld [vmem:[%s1794_s0 + $0x80] sm:$0xff]  }
   0x5   :  { %v1268_v12 = vld [vmem:[%s1794_s0 + $0x18] sm:$0xff]   ;;  %v1270_v14 = vld [vmem:[%s1794_s0 + $0x20] sm:$0xff]   ;;  %v1271_v15 = vld [vmem:[%s1794_s0 + $0x88] sm:$0xff]  }
   0x6   :  { %v1272_v16 = vld [vmem:[%s1794_s0 + $0x28] sm:$0xff]   ;;  %v1273_v17 = vld [vmem:[%s1794_s0 + $0x90] sm:$0xff]   ;;  %v1275_v19 = vld [vmem:[%s1794_s0 + $0x98] sm:$0xff]  }
   0x7   :  { %1138 = vmatpush3.bf16.msra.mxu0 %v1258_v2  ;;  %1251 = vmatpush3.bf16.msra.mxu1 %v1258_v2  ;;  %v1274_v18 = vld [vmem:[%s1794_s0 + $0x30] sm:$0xff]   ;;  %v1276_v20 = vld [vmem:[%s1794_s0 + $0x38] sm:$0xff]   ;;  %v1277_v21 = vld [vmem:[%s1794_s0 + $0xa0] sm:$0xff]  }
   0x8   :  { %1139 = vmatprep.subr.bf16.mxu0 %v1287_v0  ;;  %1247 = vmatprep.subr.bf16.mxu1 %v1287_v0  ;;  %v1278_v22 = vld [vmem:[%s1794_s0 + $0x40] sm:$0xff]   ;;  %v1279_v23 = vld [vmem:[%s1794_s0 + $0xa8] sm:$0xff]   ;;  %v1281_v25 = vld [vmem:[%s1794_s0 + $0xb0] sm:$0xff]  }
   0x9   :  { %v1280_v24 = vld [vmem:[%s1794_s0 + $0x48] sm:$0xff]   ;;  %v1282_v26 = vld [vmem:[%s1794_s0 + $0x50] sm:$0xff]   ;;  %v1283_v27 = vld [vmem:[%s1794_s0 + $0xb8] sm:$0xff]  }
   0xa   :  { %v1284_v28 = vld [vmem:[%s1794_s0 + $0x58] sm:$0xff]   ;;  %v1285_v29 = vld [vmem:[%s1794_s0 + $0xc0] ss:$0 sps:$4 sm:$0xff]  }
   0xb   :  { %1140 = vmatpush3.bf16.msra.mxu0 %v1259_v3  ;;  %1252 = vmatpush3.bf16.msra.mxu1 %v1259_v3  ;;  %v1286_v30 = vld [vmem:[%s1794_s0 + $0x60] sm:$0xff]  }
   0xc   :  { %1141 = vmatprep.subr.bf16.mxu0 %v1287_v0  ;;  %1248 = vmatprep.subr.bf16.mxu1 %v1287_v0  ;;  %v1492_v31 = vld [vmem:[%s1795_s2] ss:$0 sm:$0xff] }
   0xd   :  { %v1497_v33 = vld [vmem:[%s1796_s3] ss:$0 sm:$0xff] }
   0xf   :  { %1142 = vmatpush3.bf16.msra.mxu0 %v1260_v4  ;;  %1253 = vmatpush3.bf16.msra.mxu1 %v1260_v4 }
  0x10   :  { %1143 = vmatprep.subr.bf16.mxu0 %v1287_v0  ;;  %1249 = vmatprep.subr.bf16.mxu1 %v1287_v0 }
  0x13   :  { %1144 = vmatpush3.bf16.msra.mxu0 %v1261_v5  ;;  %1254 = vmatpush3.bf16.msra.mxu1 %v1261_v5 }
  0x16   :  { %1146 = vmatmul.mubr.msk.bf16.vlgmr.msra.gmra.mrb[0].mxu0 %vm230_vm1, %v1262_v6  ;;  %1198 = vmatmul.mubr.msk.bf16.vlgmr.msra.gmra.mrb[0].mxu1 %vm230_vm1, %v1263_v7 }
  0x17   :  { %1149 = vmatprep.mubr.msk.bf16.mxu0 %vm1288_vm0, %v1287_v0  ;;  %1201 = vmatprep.mubr.msk.bf16.mxu1 %vm1288_vm0, %v1287_v0 }
  0x1e   :  { %1150 = vmatmul.mubr.msk.bf16.gmra.mrb[4].mxu0 %vm230_vm1, %v1264_v8  ;;  %1202 = vmatmul.mubr.msk.bf16.gmra.mrb[4].mxu1 %vm230_vm1, %v1265_v9 }
  0x1f   :  { %1153 = vmatprep.mubr.msk.bf16.mxu0 %vm1288_vm0, %v1287_v0  ;;  %1205 = vmatprep.mubr.msk.bf16.mxu1 %vm1288_vm0, %v1287_v0 }
  0x26   :  { %1154 = vmatmul.mubr.msk.bf16.gmra.mrb[8].mxu0 %vm230_vm1, %v1266_v10  ;;  %1206 = vmatmul.mubr.msk.bf16.gmra.mrb[8].mxu1 %vm230_vm1, %v1267_v11 }
  0x27   :  { %1157 = vmatprep.mubr.msk.bf16.mxu0 %vm1288_vm0, %v1287_v0  ;;  %1209 = vmatprep.mubr.msk.bf16.mxu1 %vm1288_vm0, %v1287_v0 }
  0x2e   :  { %1158 = vmatmul.mubr.msk.bf16.gmra.mrb[12].mxu0 %vm230_vm1, %v1268_v12  ;;  %1210 = vmatmul.mubr.msk.bf16.gmra.mrb[12].mxu1 %vm230_vm1, %v1269_v13 }
  0x2f   :  { %1161 = vmatprep.mubr.msk.bf16.mxu0 %vm1288_vm0, %v1287_v0  ;;  %1213 = vmatprep.mubr.msk.bf16.mxu1 %vm1288_vm0, %v1287_v0 }
  0x36   :  { %1162 = vmatmul.mubr.msk.bf16.gmra.mrb[16].mxu0 %vm230_vm1, %v1270_v14  ;;  %1214 = vmatmul.mubr.msk.bf16.gmra.mrb[16].mxu1 %vm230_vm1, %v1271_v15 }
  0x37   :  { %1165 = vmatprep.mubr.msk.bf16.mxu0 %vm1288_vm0, %v1287_v0  ;;  %1217 = vmatprep.mubr.msk.bf16.mxu1 %vm1288_vm0, %v1287_v0 }
  0x3e   :  { %1166 = vmatmul.mubr.msk.bf16.gmra.mrb[20].mxu0 %vm230_vm1, %v1272_v16  ;;  %1218 = vmatmul.mubr.msk.bf16.gmra.mrb[20].mxu1 %vm230_vm1, %v1273_v17 }
  0x3f   :  { %1169 = vmatprep.mubr.msk.bf16.mxu0 %vm1288_vm0, %v1287_v0  ;;  %1221 = vmatprep.mubr.msk.bf16.mxu1 %vm1288_vm0, %v1287_v0 }
  0x46   :  { %1170 = vmatmul.mubr.msk.bf16.gmra.mrb[24].mxu0 %vm230_vm1, %v1274_v18  ;;  %1222 = vmatmul.mubr.msk.bf16.gmra.mrb[24].mxu1 %vm230_vm1, %v1275_v19 }
  0x47   :  { %1173 = vmatprep.mubr.msk.bf16.mxu0 %vm1288_vm0, %v1287_v0  ;;  %1225 = vmatprep.mubr.msk.bf16.mxu1 %vm1288_vm0, %v1287_v0 }
  0x4e   :  { %1174 = vmatmul.mubr.msk.bf16.gmra.mrb[28].mxu0 %vm230_vm1, %v1276_v20  ;;  %1226 = vmatmul.mubr.msk.bf16.gmra.mrb[28].mxu1 %vm230_vm1, %v1277_v21 }
  0x4f   :  { %1177 = vmatprep.mubr.msk.bf16.mxu0 %vm1288_vm0, %v1287_v0  ;;  %1229 = vmatprep.mubr.msk.bf16.mxu1 %vm1288_vm0, %v1287_v0 }
  0x56   :  { %1178 = vmatmul.mubr.msk.bf16.gmra.mrb[32].mxu0 %vm230_vm1, %v1278_v22  ;;  %1230 = vmatmul.mubr.msk.bf16.gmra.mrb[32].mxu1 %vm230_vm1, %v1279_v23 }
  0x57   :  { %1181 = vmatprep.mubr.msk.bf16.mxu0 %vm1288_vm0, %v1287_v0  ;;  %1233 = vmatprep.mubr.msk.bf16.mxu1 %vm1288_vm0, %v1287_v0 }
  0x5e   :  { %1182 = vmatmul.mubr.msk.bf16.gmra.mrb[36].mxu0 %vm230_vm1, %v1280_v24  ;;  %1234 = vmatmul.mubr.msk.bf16.gmra.mrb[36].mxu1 %vm230_vm1, %v1281_v25 }
  0x5f   :  { %1185 = vmatprep.mubr.msk.bf16.mxu0 %vm1288_vm0, %v1287_v0  ;;  %1237 = vmatprep.mubr.msk.bf16.mxu1 %vm1288_vm0, %v1287_v0 }
  0x66   :  { %1186 = vmatmul.mubr.msk.bf16.gmra.mrb[40].mxu0 %vm230_vm1, %v1282_v26  ;;  %1238 = vmatmul.mubr.msk.bf16.gmra.mrb[40].mxu1 %vm230_vm1, %v1283_v27 }
  0x67   :  { %1189 = vmatprep.mubr.msk.bf16.mxu0 %vm1288_vm0, %v1287_v0  ;;  %1241 = vmatprep.mubr.msk.bf16.mxu1 %vm1288_vm0, %v1287_v0 }
  0x6e   :  { %1190 = vmatmul.mubr.msk.bf16.gmra.mrb[44].mxu0 %vm230_vm1, %v1284_v28  ;;  %1242 = vmatmul.mubr.msk.bf16.gmra.mrb[44].mxu1 %vm230_vm1, %v1285_v29 }
  0x6f   :  { %1193 = vmatprep.mubr.msk.bf16.mxu0 %vm1288_vm0, %v1287_v0 }
  0x76   :  { %1194 = vmatmul.mubr.msk.bf16.gmra.mrb[48].mxu0 %vm230_vm1, %v1286_v30 }
  0xe9   :  { %v340_v32 = vpop.f32.mrb[0].mxu0  ;;  %v444_v34 = vpop.f32.mrb[0].mxu1 }
  0xea   :  { %v545_v35 = vmul.f32 %v1492_v31, %v340_v32  ;;  %v1147_v36 = vpop.f32.mrb[1].mxu0  ;;  %v571_v37 = vmul.f32 %v1492_v31, %v444_v34  ;;  %v1199_v38 = vpop.f32.mrb[1].mxu1 }
  0xeb   :  { %v343_v39 = vpop.f32.mrb[2].mxu0  ;;  %v447_v40 = vpop.f32.mrb[2].mxu1 }
  0xec   :  { %v601_v41 = vadd.f32 %v1497_v33, %v545_v35  ;;  %v546_v42 = vmul.f32 %v1492_v31, %v343_v39  ;;  %v1148_v43 = vpop.f32.mrb[3].mxu0  ;;  %v627_v44 = vadd.f32 %v1497_v33, %v571_v37  ;;  %v572_v45 = vmul.f32 %v1492_v31, %v447_v40  ;;  %v1200_v46 = vpop.f32.mrb[3].mxu1 }
  0xee   :  { %v650_v47 = vmax.f32 %v601_v41, 0.0  ;;  %v602_v48 = vadd.f32 %v1497_v33, %v546_v42  ;;  %v676_v49 = vmax.f32 %v627_v44, 0.0  ;;  %v628_v50 = vadd.f32 %v1497_v33, %v572_v45 }
  0xf0   :  { %v1056_v51 = vpack.c.bf16 %v650_v47, %v650_v47  ;;  %v651_v52 = vmax.f32 %v602_v48, 0.0  ;;  %v1082_v53 = vpack.c.bf16 %v676_v49, %v676_v49  ;;  %v677_v54 = vmax.f32 %v628_v50, 0.0 }
  0xf1   :  { %v348_v55 = vpop.f32.mrb[4].mxu0  ;;  %v452_v56 = vpop.f32.mrb[4].mxu1 }
  0xf2   :  { %897 = vst.msk [vmem:[%s1797_s4] sm:$0xf] %vm896_vm2, %v1056_v51  ;;  %v1057_v57 = vpack.c.bf16 %v651_v52, %v651_v52  ;;  %923 = vst.msk [vmem:[%s1797_s4 + $0x68] sm:$0xf] %vm896_vm2, %v1082_v53  ;;  %v547_v58 = vmul.f32 %v1492_v31, %v348_v55  ;;  %v1151_v59 = vpop.f32.mrb[5].mxu0  ;;  %v1083_v60 = vpack.c.bf16 %v677_v54, %v677_v54  ;;  %v1203_v62 = vpop.f32.mrb[5].mxu1 }
  0xf3   :  { %v573_v61 = vmul.f32 %v1492_v31, %v452_v56  ;;  %v351_v63 = vpop.f32.mrb[6].mxu0  ;;  %v455_v0 = vpop.f32.mrb[6].mxu1 }
  0xf4   :  { %898 = vst.msk [vmem:[%s1797_s4 + $0x4] sm:$0xf] %vm896_vm2, %v1057_v57  ;;  %v603_v1 = vadd.f32 %v1497_v33, %v547_v58  ;;  %924 = vst.msk [vmem:[%s1797_s4 + $0x6c] sm:$0xf] %vm896_vm2, %v1083_v60  ;;  %v548_v2 = vmul.f32 %v1492_v31, %v351_v63  ;;  %v1152_v3 = vpop.f32.mrb[7].mxu0  ;;  %v574_v5 = vmul.f32 %v1492_v31, %v455_v0  ;;  %v1204_v6 = vpop.f32.mrb[7].mxu1 }
  0xf5   :  { %v629_v4 = vadd.f32 %v1497_v33, %v573_v61 }
  0xf6   :  { %v652_v7 = vmax.f32 %v603_v1, 0.0  ;;  %v604_v8 = vadd.f32 %v1497_v33, %v548_v2  ;;  %v630_v10 = vadd.f32 %v1497_v33, %v574_v5 }
  0xf7   :  { %v678_v9 = vmax.f32 %v629_v4, 0.0 }
  0xf8   :  { %v1058_v11 = vpack.c.bf16 %v652_v7, %v652_v7  ;;  %v653_v12 = vmax.f32 %v604_v8, 0.0  ;;  %v679_v14 = vmax.f32 %v630_v10, 0.0 }
  0xf9   :  { %v1084_v13 = vpack.c.bf16 %v678_v9, %v678_v9  ;;  %v356_v15 = vpop.f32.mrb[8].mxu0  ;;  %v460_v16 = vpop.f32.mrb[8].mxu1 }
  0xfa   :  { %899 = vst.msk [vmem:[%s1797_s4 + $0x8] sm:$0xf] %vm896_vm2, %v1058_v11  ;;  %v1059_v17 = vpack.c.bf16 %v653_v12, %v653_v12  ;;  %v549_v18 = vmul.f32 %v1492_v31, %v356_v15  ;;  %v1155_v19 = vpop.f32.mrb[9].mxu0  ;;  %v1085_v20 = vpack.c.bf16 %v679_v14, %v679_v14  ;;  %v575_v21 = vmul.f32 %v1492_v31, %v460_v16  ;;  %v1207_v22 = vpop.f32.mrb[9].mxu1 }
  0xfb   :  { %925 = vst.msk [vmem:[%s1797_s4 + $0x70] sm:$0xf] %vm896_vm2, %v1084_v13  ;;  %v359_v23 = vpop.f32.mrb[10].mxu0  ;;  %v463_v24 = vpop.f32.mrb[10].mxu1 }
  0xfc   :  { %900 = vst.msk [vmem:[%s1797_s4 + $0xc] sm:$0xf] %vm896_vm2, %v1059_v17  ;;  %v605_v25 = vadd.f32 %v1497_v33, %v549_v18  ;;  %926 = vst.msk [vmem:[%s1797_s4 + $0x74] sm:$0xf] %vm896_vm2, %v1085_v20  ;;  %v550_v26 = vmul.f32 %v1492_v31, %v359_v23  ;;  %v1156_v27 = vpop.f32.mrb[11].mxu0  ;;  %v631_v28 = vadd.f32 %v1497_v33, %v575_v21  ;;  %v1208_v30 = vpop.f32.mrb[11].mxu1 }
  0xfd   :  { %v576_v29 = vmul.f32 %v1492_v31, %v463_v24 }
  0xfe   :  { %v654_v32 = vmax.f32 %v605_v25, 0.0  ;;  %v606_v34 = vadd.f32 %v1497_v33, %v550_v26  ;;  %v680_v35 = vmax.f32 %v631_v28, 0.0 }
  0xff   :  { %v632_v36 = vadd.f32 %v1497_v33, %v576_v29 }
 0x100   :  { %v1060_v37 = vpack.c.bf16 %v654_v32, %v654_v32  ;;  %v655_v38 = vmax.f32 %v606_v34, 0.0  ;;  %v1086_v39 = vpack.c.bf16 %v680_v35, %v680_v35 }
 0x101   :  { %v681_v40 = vmax.f32 %v632_v36, 0.0  ;;  %v364_v41 = vpop.f32.mrb[12].mxu0  ;;  %v468_v42 = vpop.f32.mrb[12].mxu1 }
 0x102   :  { %901 = vst.msk [vmem:[%s1797_s4 + $0x10] sm:$0xf] %vm896_vm2, %v1060_v37  ;;  %v1061_v43 = vpack.c.bf16 %v655_v38, %v655_v38  ;;  %927 = vst.msk [vmem:[%s1797_s4 + $0x78] sm:$0xf] %vm896_vm2, %v1086_v39  ;;  %v551_v44 = vmul.f32 %v1492_v31, %v364_v41  ;;  %v1159_v45 = vpop.f32.mrb[13].mxu0  ;;  %v577_v47 = vmul.f32 %v1492_v31, %v468_v42  ;;  %v1211_v48 = vpop.f32.mrb[13].mxu1 }
 0x103   :  { %v1087_v46 = vpack.c.bf16 %v681_v40, %v681_v40  ;;  %v367_v49 = vpop.f32.mrb[14].mxu0  ;;  %v471_v50 = vpop.f32.mrb[14].mxu1 }
 0x104   :  { %902 = vst.msk [vmem:[%s1797_s4 + $0x14] sm:$0xf] %vm896_vm2, %v1061_v43  ;;  %v607_v51 = vadd.f32 %v1497_v33, %v551_v44  ;;  %v552_v52 = vmul.f32 %v1492_v31, %v367_v49  ;;  %v1160_v53 = vpop.f32.mrb[15].mxu0  ;;  %v633_v54 = vadd.f32 %v1497_v33, %v577_v47  ;;  %v578_v55 = vmul.f32 %v1492_v31, %v471_v50  ;;  %v1212_v56 = vpop.f32.mrb[15].mxu1 }
 0x105   :  { %928 = vst.msk [vmem:[%s1797_s4 + $0x7c] sm:$0xf] %vm896_vm2, %v1087_v46 }
 0x106   :  { %v656_v57 = vmax.f32 %v607_v51, 0.0  ;;  %v608_v58 = vadd.f32 %v1497_v33, %v552_v52  ;;  %v682_v59 = vmax.f32 %v633_v54, 0.0  ;;  %v634_v60 = vadd.f32 %v1497_v33, %v578_v55 }
 0x108   :  { %v1062_v61 = vpack.c.bf16 %v656_v57, %v656_v57  ;;  %v657_v62 = vmax.f32 %v608_v58, 0.0  ;;  %v1088_v63 = vpack.c.bf16 %v682_v59, %v682_v59  ;;  %v683_v0 = vmax.f32 %v634_v60, 0.0 }
 0x109   :  { %v372_v1 = vpop.f32.mrb[16].mxu0  ;;  %v476_v2 = vpop.f32.mrb[16].mxu1 }
 0x10a   :  { %903 = vst.msk [vmem:[%s1797_s4 + $0x18] sm:$0xf] %vm896_vm2, %v1062_v61  ;;  %v1063_v3 = vpack.c.bf16 %v657_v62, %v657_v62  ;;  %929 = vst.msk [vmem:[%s1797_s4 + $0x80] sm:$0xf] %vm896_vm2, %v1088_v63  ;;  %v553_v4 = vmul.f32 %v1492_v31, %v372_v1  ;;  %v1163_v5 = vpop.f32.mrb[17].mxu0  ;;  %v1089_v6 = vpack.c.bf16 %v683_v0, %v683_v0  ;;  %v1215_v8 = vpop.f32.mrb[17].mxu1 }
 0x10b   :  { %v579_v7 = vmul.f32 %v1492_v31, %v476_v2  ;;  %v375_v9 = vpop.f32.mrb[18].mxu0  ;;  %v479_v10 = vpop.f32.mrb[18].mxu1 }
 0x10c   :  { %904 = vst.msk [vmem:[%s1797_s4 + $0x1c] sm:$0xf] %vm896_vm2, %v1063_v3  ;;  %v609_v11 = vadd.f32 %v1497_v33, %v553_v4  ;;  %930 = vst.msk [vmem:[%s1797_s4 + $0x84] sm:$0xf] %vm896_vm2, %v1089_v6  ;;  %v554_v12 = vmul.f32 %v1492_v31, %v375_v9  ;;  %v1164_v13 = vpop.f32.mrb[19].mxu0  ;;  %v580_v15 = vmul.f32 %v1492_v31, %v479_v10  ;;  %v1216_v16 = vpop.f32.mrb[19].mxu1 }
 0x10d   :  { %v635_v14 = vadd.f32 %v1497_v33, %v579_v7 }
 0x10e   :  { %v658_v17 = vmax.f32 %v609_v11, 0.0  ;;  %v610_v18 = vadd.f32 %v1497_v33, %v554_v12  ;;  %v636_v20 = vadd.f32 %v1497_v33, %v580_v15 }
 0x10f   :  { %v684_v19 = vmax.f32 %v635_v14, 0.0 }
 0x110   :  { %v1064_v21 = vpack.c.bf16 %v658_v17, %v658_v17  ;;  %v659_v22 = vmax.f32 %v610_v18, 0.0  ;;  %v685_v24 = vmax.f32 %v636_v20, 0.0 }
 0x111   :  { %v1090_v23 = vpack.c.bf16 %v684_v19, %v684_v19  ;;  %v380_v25 = vpop.f32.mrb[20].mxu0  ;;  %v484_v26 = vpop.f32.mrb[20].mxu1 }
 0x112   :  { %905 = vst.msk [vmem:[%s1797_s4 + $0x20] sm:$0xf] %vm896_vm2, %v1064_v21  ;;  %v1065_v27 = vpack.c.bf16 %v659_v22, %v659_v22  ;;  %v555_v28 = vmul.f32 %v1492_v31, %v380_v25  ;;  %v1167_v29 = vpop.f32.mrb[21].mxu0  ;;  %v1091_v30 = vpack.c.bf16 %v685_v24, %v685_v24  ;;  %v581_v32 = vmul.f32 %v1492_v31, %v484_v26  ;;  %v1219_v34 = vpop.f32.mrb[21].mxu1 }
 0x113   :  { %931 = vst.msk [vmem:[%s1797_s4 + $0x88] sm:$0xf] %vm896_vm2, %v1090_v23  ;;  %v383_v35 = vpop.f32.mrb[22].mxu0  ;;  %v487_v36 = vpop.f32.mrb[22].mxu1 }
 0x114   :  { %906 = vst.msk [vmem:[%s1797_s4 + $0x24] sm:$0xf] %vm896_vm2, %v1065_v27  ;;  %v611_v37 = vadd.f32 %v1497_v33, %v555_v28  ;;  %932 = vst.msk [vmem:[%s1797_s4 + $0x8c] sm:$0xf] %vm896_vm2, %v1091_v30  ;;  %v556_v38 = vmul.f32 %v1492_v31, %v383_v35  ;;  %v1168_v39 = vpop.f32.mrb[23].mxu0  ;;  %v637_v40 = vadd.f32 %v1497_v33, %v581_v32  ;;  %v1220_v42 = vpop.f32.mrb[23].mxu1 }
 0x115   :  { %v582_v41 = vmul.f32 %v1492_v31, %v487_v36 }
 0x116   :  { %v660_v43 = vmax.f32 %v611_v37, 0.0  ;;  %v612_v44 = vadd.f32 %v1497_v33, %v556_v38  ;;  %v686_v45 = vmax.f32 %v637_v40, 0.0 }
 0x117   :  { %v638_v46 = vadd.f32 %v1497_v33, %v582_v41 }
 0x118   :  { %v1066_v47 = vpack.c.bf16 %v660_v43, %v660_v43  ;;  %v661_v48 = vmax.f32 %v612_v44, 0.0  ;;  %v1092_v49 = vpack.c.bf16 %v686_v45, %v686_v45 }
 0x119   :  { %v687_v50 = vmax.f32 %v638_v46, 0.0  ;;  %v388_v51 = vpop.f32.mrb[24].mxu0  ;;  %v492_v52 = vpop.f32.mrb[24].mxu1 }
 0x11a   :  { %907 = vst.msk [vmem:[%s1797_s4 + $0x28] sm:$0xf] %vm896_vm2, %v1066_v47  ;;  %v1067_v53 = vpack.c.bf16 %v661_v48, %v661_v48  ;;  %933 = vst.msk [vmem:[%s1797_s4 + $0x90] sm:$0xf] %vm896_vm2, %v1092_v49  ;;  %v557_v54 = vmul.f32 %v1492_v31, %v388_v51  ;;  %v1171_v55 = vpop.f32.mrb[25].mxu0  ;;  %v583_v57 = vmul.f32 %v1492_v31, %v492_v52  ;;  %v1223_v58 = vpop.f32.mrb[25].mxu1 }
 0x11b   :  { %v1093_v56 = vpack.c.bf16 %v687_v50, %v687_v50  ;;  %v391_v59 = vpop.f32.mrb[26].mxu0  ;;  %v495_v60 = vpop.f32.mrb[26].mxu1 }
 0x11c   :  { %908 = vst.msk [vmem:[%s1797_s4 + $0x2c] sm:$0xf] %vm896_vm2, %v1067_v53  ;;  %v613_v61 = vadd.f32 %v1497_v33, %v557_v54  ;;  %v558_v62 = vmul.f32 %v1492_v31, %v391_v59  ;;  %v1172_v63 = vpop.f32.mrb[27].mxu0  ;;  %v639_v0 = vadd.f32 %v1497_v33, %v583_v57  ;;  %v584_v1 = vmul.f32 %v1492_v31, %v495_v60  ;;  %v1224_v2 = vpop.f32.mrb[27].mxu1 }
 0x11d   :  { %934 = vst.msk [vmem:[%s1797_s4 + $0x94] sm:$0xf] %vm896_vm2, %v1093_v56 }
 0x11e   :  { %v662_v3 = vmax.f32 %v613_v61, 0.0  ;;  %v614_v4 = vadd.f32 %v1497_v33, %v558_v62  ;;  %v688_v5 = vmax.f32 %v639_v0, 0.0  ;;  %v640_v6 = vadd.f32 %v1497_v33, %v584_v1 }
 0x120   :  { %v1068_v7 = vpack.c.bf16 %v662_v3, %v662_v3  ;;  %v663_v8 = vmax.f32 %v614_v4, 0.0  ;;  %v1094_v9 = vpack.c.bf16 %v688_v5, %v688_v5  ;;  %v689_v10 = vmax.f32 %v640_v6, 0.0 }
 0x121   :  { %v396_v11 = vpop.f32.mrb[28].mxu0  ;;  %v500_v12 = vpop.f32.mrb[28].mxu1 }
 0x122   :  { %909 = vst.msk [vmem:[%s1797_s4 + $0x30] sm:$0xf] %vm896_vm2, %v1068_v7  ;;  %v1069_v13 = vpack.c.bf16 %v663_v8, %v663_v8  ;;  %935 = vst.msk [vmem:[%s1797_s4 + $0x98] sm:$0xf] %vm896_vm2, %v1094_v9  ;;  %v559_v14 = vmul.f32 %v1492_v31, %v396_v11  ;;  %v1175_v15 = vpop.f32.mrb[29].mxu0  ;;  %v1095_v16 = vpack.c.bf16 %v689_v10, %v689_v10  ;;  %v1227_v18 = vpop.f32.mrb[29].mxu1 }
 0x123   :  { %v585_v17 = vmul.f32 %v1492_v31, %v500_v12  ;;  %v399_v19 = vpop.f32.mrb[30].mxu0  ;;  %v503_v20 = vpop.f32.mrb[30].mxu1 }
 0x124   :  { %910 = vst.msk [vmem:[%s1797_s4 + $0x34] sm:$0xf] %vm896_vm2, %v1069_v13  ;;  %v615_v21 = vadd.f32 %v1497_v33, %v559_v14  ;;  %936 = vst.msk [vmem:[%s1797_s4 + $0x9c] sm:$0xf] %vm896_vm2, %v1095_v16  ;;  %v560_v22 = vmul.f32 %v1492_v31, %v399_v19  ;;  %v1176_v23 = vpop.f32.mrb[31].mxu0  ;;  %v586_v25 = vmul.f32 %v1492_v31, %v503_v20  ;;  %v1228_v26 = vpop.f32.mrb[31].mxu1 }
 0x125   :  { %v641_v24 = vadd.f32 %v1497_v33, %v585_v17 }
 0x126   :  { %v664_v27 = vmax.f32 %v615_v21, 0.0  ;;  %v616_v28 = vadd.f32 %v1497_v33, %v560_v22  ;;  %v642_v30 = vadd.f32 %v1497_v33, %v586_v25 }
 0x127   :  { %v690_v29 = vmax.f32 %v641_v24, 0.0 }
 0x128   :  { %v1070_v32 = vpack.c.bf16 %v664_v27, %v664_v27  ;;  %v665_v34 = vmax.f32 %v616_v28, 0.0  ;;  %v691_v36 = vmax.f32 %v642_v30, 0.0 }
 0x129   :  { %v1096_v35 = vpack.c.bf16 %v690_v29, %v690_v29  ;;  %v404_v37 = vpop.f32.mrb[32].mxu0  ;;  %v508_v38 = vpop.f32.mrb[32].mxu1 }
 0x12a   :  { %911 = vst.msk [vmem:[%s1797_s4 + $0x38] sm:$0xf] %vm896_vm2, %v1070_v32  ;;  %v1071_v39 = vpack.c.bf16 %v665_v34, %v665_v34  ;;  %v561_v40 = vmul.f32 %v1492_v31, %v404_v37  ;;  %v1179_v41 = vpop.f32.mrb[33].mxu0  ;;  %v1097_v42 = vpack.c.bf16 %v691_v36, %v691_v36  ;;  %v587_v43 = vmul.f32 %v1492_v31, %v508_v38  ;;  %v1231_v44 = vpop.f32.mrb[33].mxu1 }
 0x12b   :  { %937 = vst.msk [vmem:[%s1797_s4 + $0xa0] sm:$0xf] %vm896_vm2, %v1096_v35  ;;  %v407_v45 = vpop.f32.mrb[34].mxu0  ;;  %v511_v46 = vpop.f32.mrb[34].mxu1 }
 0x12c   :  { %912 = vst.msk [vmem:[%s1797_s4 + $0x3c] sm:$0xf] %vm896_vm2, %v1071_v39  ;;  %v617_v47 = vadd.f32 %v1497_v33, %v561_v40  ;;  %938 = vst.msk [vmem:[%s1797_s4 + $0xa4] sm:$0xf] %vm896_vm2, %v1097_v42  ;;  %v562_v48 = vmul.f32 %v1492_v31, %v407_v45  ;;  %v1180_v49 = vpop.f32.mrb[35].mxu0  ;;  %v643_v50 = vadd.f32 %v1497_v33, %v587_v43  ;;  %v1232_v52 = vpop.f32.mrb[35].mxu1 }
 0x12d   :  { %v588_v51 = vmul.f32 %v1492_v31, %v511_v46 }
 0x12e   :  { %v666_v53 = vmax.f32 %v617_v47, 0.0  ;;  %v618_v54 = vadd.f32 %v1497_v33, %v562_v48  ;;  %v692_v55 = vmax.f32 %v643_v50, 0.0 }
 0x12f   :  { %v644_v56 = vadd.f32 %v1497_v33, %v588_v51 }
 0x130   :  { %v1072_v57 = vpack.c.bf16 %v666_v53, %v666_v53  ;;  %v667_v58 = vmax.f32 %v618_v54, 0.0  ;;  %v1098_v59 = vpack.c.bf16 %v692_v55, %v692_v55 }
 0x131   :  { %v693_v60 = vmax.f32 %v644_v56, 0.0  ;;  %v412_v61 = vpop.f32.mrb[36].mxu0  ;;  %v516_v62 = vpop.f32.mrb[36].mxu1 }
 0x132   :  { %913 = vst.msk [vmem:[%s1797_s4 + $0x40] sm:$0xf] %vm896_vm2, %v1072_v57  ;;  %v1073_v63 = vpack.c.bf16 %v667_v58, %v667_v58  ;;  %939 = vst.msk [vmem:[%s1797_s4 + $0xa8] sm:$0xf] %vm896_vm2, %v1098_v59  ;;  %v563_v0 = vmul.f32 %v1492_v31, %v412_v61  ;;  %v1183_v1 = vpop.f32.mrb[37].mxu0  ;;  %v589_v3 = vmul.f32 %v1492_v31, %v516_v62  ;;  %v1235_v4 = vpop.f32.mrb[37].mxu1 }
 0x133   :  { %v1099_v2 = vpack.c.bf16 %v693_v60, %v693_v60  ;;  %v415_v5 = vpop.f32.mrb[38].mxu0  ;;  %v519_v6 = vpop.f32.mrb[38].mxu1 }
 0x134   :  { %914 = vst.msk [vmem:[%s1797_s4 + $0x44] sm:$0xf] %vm896_vm2, %v1073_v63  ;;  %v619_v7 = vadd.f32 %v1497_v33, %v563_v0  ;;  %v564_v8 = vmul.f32 %v1492_v31, %v415_v5  ;;  %v1184_v9 = vpop.f32.mrb[39].mxu0  ;;  %v645_v10 = vadd.f32 %v1497_v33, %v589_v3  ;;  %v590_v11 = vmul.f32 %v1492_v31, %v519_v6  ;;  %v1236_v12 = vpop.f32.mrb[39].mxu1 }
 0x135   :  { %940 = vst.msk [vmem:[%s1797_s4 + $0xac] sm:$0xf] %vm896_vm2, %v1099_v2 }
 0x136   :  { %v668_v13 = vmax.f32 %v619_v7, 0.0  ;;  %v620_v14 = vadd.f32 %v1497_v33, %v564_v8  ;;  %v694_v15 = vmax.f32 %v645_v10, 0.0  ;;  %v646_v16 = vadd.f32 %v1497_v33, %v590_v11 }
 0x138   :  { %v1074_v17 = vpack.c.bf16 %v668_v13, %v668_v13  ;;  %v669_v18 = vmax.f32 %v620_v14, 0.0  ;;  %v1100_v19 = vpack.c.bf16 %v694_v15, %v694_v15  ;;  %v695_v20 = vmax.f32 %v646_v16, 0.0 }
 0x139   :  { %v420_v21 = vpop.f32.mrb[40].mxu0  ;;  %v524_v22 = vpop.f32.mrb[40].mxu1 }
 0x13a   :  { %915 = vst.msk [vmem:[%s1797_s4 + $0x48] sm:$0xf] %vm896_vm2, %v1074_v17  ;;  %v1075_v23 = vpack.c.bf16 %v669_v18, %v669_v18  ;;  %941 = vst.msk [vmem:[%s1797_s4 + $0xb0] sm:$0xf] %vm896_vm2, %v1100_v19  ;;  %v565_v24 = vmul.f32 %v1492_v31, %v420_v21  ;;  %v1187_v25 = vpop.f32.mrb[41].mxu0  ;;  %v1101_v26 = vpack.c.bf16 %v695_v20, %v695_v20  ;;  %v1239_v28 = vpop.f32.mrb[41].mxu1 }
 0x13b   :  { %v591_v27 = vmul.f32 %v1492_v31, %v524_v22  ;;  %v423_v29 = vpop.f32.mrb[42].mxu0  ;;  %v527_v30 = vpop.f32.mrb[42].mxu1 }
 0x13c   :  { %916 = vst.msk [vmem:[%s1797_s4 + $0x4c] sm:$0xf] %vm896_vm2, %v1075_v23  ;;  %v621_v32 = vadd.f32 %v1497_v33, %v565_v24  ;;  %942 = vst.msk [vmem:[%s1797_s4 + $0xb4] sm:$0xf] %vm896_vm2, %v1101_v26  ;;  %v566_v34 = vmul.f32 %v1492_v31, %v423_v29  ;;  %v1188_v35 = vpop.f32.mrb[43].mxu0  ;;  %v592_v37 = vmul.f32 %v1492_v31, %v527_v30  ;;  %v1240_v38 = vpop.f32.mrb[43].mxu1 }
 0x13d   :  { %v647_v36 = vadd.f32 %v1497_v33, %v591_v27 }
 0x13e   :  { %v670_v39 = vmax.f32 %v621_v32, 0.0  ;;  %v622_v40 = vadd.f32 %v1497_v33, %v566_v34  ;;  %v648_v42 = vadd.f32 %v1497_v33, %v592_v37 }
 0x13f   :  { %v696_v41 = vmax.f32 %v647_v36, 0.0 }
 0x140   :  { %v1076_v43 = vpack.c.bf16 %v670_v39, %v670_v39  ;;  %v671_v44 = vmax.f32 %v622_v40, 0.0  ;;  %v697_v46 = vmax.f32 %v648_v42, 0.0 }
 0x141   :  { %v1102_v45 = vpack.c.bf16 %v696_v41, %v696_v41  ;;  %v428_v47 = vpop.f32.mrb[44].mxu0  ;;  %v532_v48 = vpop.f32.mrb[44].mxu1 }
 0x142   :  { %917 = vst.msk [vmem:[%s1797_s4 + $0x50] sm:$0xf] %vm896_vm2, %v1076_v43  ;;  %v1077_v49 = vpack.c.bf16 %v671_v44, %v671_v44  ;;  %v567_v50 = vmul.f32 %v1492_v31, %v428_v47  ;;  %v1191_v51 = vpop.f32.mrb[45].mxu0  ;;  %v1103_v52 = vpack.c.bf16 %v697_v46, %v697_v46  ;;  %v593_v53 = vmul.f32 %v1492_v31, %v532_v48  ;;  %v1243_v54 = vpop.f32.mrb[45].mxu1 }
 0x143   :  { %943 = vst.msk [vmem:[%s1797_s4 + $0xb8] sm:$0xf] %vm896_vm2, %v1102_v45  ;;  %v431_v55 = vpop.f32.mrb[46].mxu0  ;;  %v535_v56 = vpop.f32.mrb[46].mxu1 }
 0x144   :  { %918 = vst.msk [vmem:[%s1797_s4 + $0x54] sm:$0xf] %vm896_vm2, %v1077_v49  ;;  %v623_v57 = vadd.f32 %v1497_v33, %v567_v50  ;;  %944 = vst.msk [vmem:[%s1797_s4 + $0xbc] sm:$0xf] %vm896_vm2, %v1103_v52  ;;  %v568_v58 = vmul.f32 %v1492_v31, %v431_v55  ;;  %v1192_v59 = vpop.f32.mrb[47].mxu0  ;;  %v649_v60 = vadd.f32 %v1497_v33, %v593_v53  ;;  %v1244_v61 = vpop.f32.mrb[47].mxu1 }
 0x146   :  { %v672_v62 = vmax.f32 %v623_v57, 0.0  ;;  %v624_v63 = vadd.f32 %v1497_v33, %v568_v58  ;;  %v698_v0 = vmax.f32 %v649_v60, 0.0 }
 0x148   :  { %v1078_v1 = vpack.c.bf16 %v672_v62, %v672_v62  ;;  %v673_v2 = vmax.f32 %v624_v63, 0.0  ;;  %v1104_v3 = vpack.c.bf16 %v698_v0, %v698_v0 }
 0x149   :  { %v436_v4 = vpop.f32.mrb[48].mxu0 }
 0x14a   :  { %919 = vst.msk [vmem:[%s1797_s4 + $0x58] sm:$0xf] %vm896_vm2, %v1078_v1  ;;  %v1079_v5 = vpack.c.bf16 %v673_v2, %v673_v2  ;;  %945 = vst.msk [vmem:[%s1797_s4 + $0xc0] sm:$0xf] %vm896_vm2, %v1104_v3  ;;  %v569_v6 = vmul.f32 %v1492_v31, %v436_v4  ;;  %v1195_v7 = vpop.f32.mrb[49].mxu0 }
 0x14b   :  { %v439_v8 = vpop.f32.mrb[50].mxu0 }
 0x14c   :  { %920 = vst.msk [vmem:[%s1797_s4 + $0x5c] sm:$0xf] %vm896_vm2, %v1079_v5  ;;  %v625_v9 = vadd.f32 %v1497_v33, %v569_v6  ;;  %v570_v10 = vmul.f32 %v1492_v31, %v439_v8  ;;  %v1196_v11 = vpop.f32.mrb[51].mxu0 }
 0x14e   :  { %v674_v12 = vmax.f32 %v625_v9, 0.0  ;;  %v626_v13 = vadd.f32 %v1497_v33, %v570_v10 }
 0x150   :  { %v1080_v14 = vpack.c.bf16 %v674_v12, %v674_v12  ;;  %v675_v15 = vmax.f32 %v626_v13, 0.0 }
 0x152   :  { %921 = vst.msk [vmem:[%s1797_s4 + $0x60] sm:$0xf] %vm896_vm2, %v1080_v14  ;;  %v1081_v16 = vpack.c.bf16 %v675_v15, %v675_v15 }
 0x154   :  { %922 = vst.msk [vmem:[%s1797_s4 + $0x64] sm:$0xf] %vm896_vm2, %v1081_v16 }

// kernel: forward.6
= control target key start
LH: loop header
LB: loop body
LE: loop exit
PB: predicated region body
PF: predicated region fallthrough
CT: control target
= control target key end

     0   :  { %v407_v0 = vmov 0   ;;  %vm141_vm0 = vcmask 130048   ;;  %vm307_vm1 = vcmask 257024   ;;  %s534_s1 = inlined_call_operand.vmem [shape: bf16[144,32], index: 1, kind: input, shape index: {}]   ;;  %s535_s0 = inlined_call_operand.vmem [shape: bf16[72,144], index: 0, kind: input, shape index: {}]   ;;  %s536_s2 = inlined_call_operand.vmem [shape: f32[1,32], index: 2, kind: input, shape index: {}]   ;;  %s537_s3 = inlined_call_operand.vmem [shape: f32[1,32], index: 3, kind: input, shape index: {}]   ;;  %s538_s4 = inlined_call_operand.vmem [shape: bf16[72,32], index: 4, kind: output, shape index: {}]  }
   0x1   :  { %157 = vmatprep.subr.bf16.mxu0 %v407_v0  ;;  %v384_v1 = vld [vmem:[%s534_s1] sm:$0xff]   ;;  %365 = vmatprep.subr.bf16.mxu1 %v407_v0  ;;  %v385_v2 = vld [vmem:[%s534_s1 + $0x8] sm:$0xff]   ;;  %v386_v3 = vld [vmem:[%s534_s1 + $0x10] sm:$0xff]  }
   0x2   :  { %158 = vmatpush1.bf16.msra.mxu0 %v384_v1  ;;  %374 = vmatpush1.bf16.msra.mxu1 %v384_v1  ;;  %v387_v4 = vld [vmem:[%s534_s1 + $0x18] sm:$0xff]   ;;  %v395_v5 = vld [vmem:[%s535_s0 + $0x4] ss:$8 sps:$4 sm:$0xff]   ;;  %v390_v9 = vld [vmem:[%s534_s1 + $0x30] sm:$0xff]  }
   0x3   :  { %159 = vmatprep.subr.bf16.mxu0 %v407_v0  ;;  %366 = vmatprep.subr.bf16.mxu1 %v407_v0  ;;  %v398_v6 = vld [vmem:[%s535_s0 + $0x34] ss:$8 sps:$4 sm:$0xff]   ;;  %v388_v7 = vld [vmem:[%s534_s1 + $0x20] sm:$0xff]   ;;  %v389_v8 = vld [vmem:[%s534_s1 + $0x28] sm:$0xff]  }
   0x4   :  { %340 = vmatprep.mubr.msk.bf16.mxu0 %vm141_vm0, %v395_v5  ;;  %343 = vmatprep.mubr.msk.bf16.mxu1 %vm141_vm0, %v398_v6  ;;  %v391_v10 = vld [vmem:[%s534_s1 + $0x38] sm:$0xff]   ;;  %v392_v11 = vld [vmem:[%s534_s1 + $0x40] sm:$0xff]  }
   0x5   :  { %v26_v12 = vld [vmem:[%s535_s0 + $0x40] sm:$0xff]  ;;  %v396_v14 = vld [vmem:[%s535_s0 + $0x30] ss:$8 sps:$4 sm:$0xff]   ;;  %v399_v15 = vld [vmem:[%s535_s0 + $0x14] ss:$8 sps:$4 sm:$0xff]  }
   0x6   :  { %160 = vmatpush1.bf16.msra.mxu0 %v385_v2  ;;  %375 = vmatpush1.bf16.msra.mxu1 %v385_v2  ;;  %v393_v13 = vld [vmem:[%s535_s0] ss:$8 sps:$4 sm:$0xff]   ;;  %v330_v16 = vcombine.high %v26_v12, %v26_v12  ;;  %v401_v17 = vld [vmem:[%s535_s0 + $0x10] ss:$8 sps:$4 sm:$0xff]   ;;  %v329_v18 = vcombine.low %v26_v12, %v26_v12  ;;  %v403_v19 = vld [vmem:[%s535_s0 + $0x24] ss:$8 sps:$4 sm:$0xff]  }
   0x7   :  { %161 = vmatprep.subr.bf16.mxu0 %v407_v0  ;;  %367 = vmatprep.subr.bf16.mxu1 %v407_v0  ;;  %v406_v20 = vld [vmem:[%s535_s0 + $0x20] ss:$8 sps:$4 sm:$0xff]  }
   0x8   :  { %v345_v21 = vld [vmem:[%s536_s2] ss:$0 sm:$0xff] }
   0x9   :  { %v346_v23 = vld [vmem:[%s537_s3] ss:$0 sm:$0xff] }
   0xa   :  { %162 = vmatpush1.bf16.msra.mxu0 %v386_v3  ;;  %376 = vmatpush1.bf16.msra.mxu1 %v386_v3 }
   0xb   :  { %163 = vmatprep.subr.bf16.mxu0 %v407_v0  ;;  %368 = vmatprep.subr.bf16.mxu1 %v407_v0 }
   0xe   :  { %164 = vmatpush1.bf16.msra.mxu0 %v387_v4  ;;  %377 = vmatpush1.bf16.msra.mxu1 %v387_v4 }
   0xf   :  { %165 = vmatprep.subr.bf16.mxu0 %v407_v0  ;;  %369 = vmatprep.subr.bf16.mxu1 %v407_v0 }
  0x12   :  { %166 = vmatpush1.bf16.msra.mxu0 %v388_v7  ;;  %378 = vmatpush1.bf16.msra.mxu1 %v388_v7 }
  0x13   :  { %167 = vmatprep.subr.bf16.mxu0 %v407_v0  ;;  %370 = vmatprep.subr.bf16.mxu1 %v407_v0 }
  0x16   :  { %168 = vmatpush1.bf16.msra.mxu0 %v389_v8  ;;  %379 = vmatpush1.bf16.msra.mxu1 %v389_v8 }
  0x17   :  { %169 = vmatprep.subr.bf16.mxu0 %v407_v0  ;;  %371 = vmatprep.subr.bf16.mxu1 %v407_v0 }
  0x1a   :  { %170 = vmatpush1.bf16.msra.mxu0 %v390_v9  ;;  %380 = vmatpush1.bf16.msra.mxu1 %v390_v9 }
  0x1b   :  { %171 = vmatprep.subr.bf16.mxu0 %v407_v0  ;;  %372 = vmatprep.subr.bf16.mxu1 %v407_v0 }
  0x1e   :  { %172 = vmatpush1.bf16.msra.mxu0 %v391_v10  ;;  %381 = vmatpush1.bf16.msra.mxu1 %v391_v10 }
  0x1f   :  { %173 = vmatprep.subr.bf16.mxu0 %v407_v0  ;;  %373 = vmatprep.subr.bf16.mxu1 %v407_v0 }
  0x22   :  { %174 = vmatpush1.bf16.msra.mxu0 %v392_v11  ;;  %382 = vmatpush1.bf16.msra.mxu1 %v392_v11 }
  0x25   :  { %190 = vmatmul.mubr.bf16.vlgmr.msra.gmra.mrb[0].mxu0 %v393_v13  ;;  %214 = vmatmul.mubr.bf16.vlgmr.msra.gmra.mrb[0].mxu1 %v396_v14 }
  0x26   :  { %341 = vmatprep.mubr.msk.bf16.mxu0 %vm141_vm0, %v399_v15  ;;  %344 = vmatprep.mubr.msk.bf16.mxu1 %vm141_vm0, %v330_v16 }
  0x2d   :  { %198 = vmatmul.mubr.bf16.gmra.mrb[4].mxu0 %v401_v17  ;;  %222 = vmatmul.mubr.bf16.gmra.mrb[4].mxu1 %v329_v18 }
  0x2e   :  { %342 = vmatprep.mubr.msk.bf16.mxu0 %vm141_vm0, %v403_v19 }
  0x35   :  { %206 = vmatmul.mubr.bf16.gmra.mrb[8].mxu0 %v406_v20 }
  0xf8   :  { %v191_v22 = vpop.f32.mrb[0].mxu0  ;;  %v215_v24 = vpop.f32.mrb[0].mxu1 }
  0xf9   :  { %v236_v25 = vmul.f32 %v345_v21, %v191_v22  ;;  %v193_v26 = vpop.f32.mrb[1].mxu0  ;;  %v242_v27 = vmul.f32 %v345_v21, %v215_v24  ;;  %v217_v28 = vpop.f32.mrb[1].mxu1 }
  0xfa   :  { %v194_v29 = vpop.f32.mrb[2].mxu0  ;;  %v218_v30 = vpop.f32.mrb[2].mxu1 }
  0xfb   :  { %v252_v31 = vadd.f32 %v346_v23, %v236_v25  ;;  %v237_v32 = vmul.f32 %v345_v21, %v194_v29  ;;  %v196_v33 = vpop.f32.mrb[3].mxu0  ;;  %v258_v34 = vadd.f32 %v346_v23, %v242_v27  ;;  %v243_v35 = vmul.f32 %v345_v21, %v218_v30  ;;  %v220_v36 = vpop.f32.mrb[3].mxu1 }
  0xfd   :  { %v261_v37 = vmax.f32 %v252_v31, 0.0  ;;  %v253_v38 = vadd.f32 %v346_v23, %v237_v32  ;;  %v267_v39 = vmax.f32 %v258_v34, 0.0  ;;  %v259_v40 = vadd.f32 %v346_v23, %v243_v35 }
  0xff   :  { %v356_v41 = vpack.c.bf16 %v261_v37, %v261_v37  ;;  %v262_v42 = vmax.f32 %v253_v38, 0.0  ;;  %v362_v43 = vpack.c.bf16 %v267_v39, %v267_v39  ;;  %v268_v44 = vmax.f32 %v259_v40, 0.0 }
 0x100   :  { %v199_v45 = vpop.f32.mrb[4].mxu0  ;;  %v223_v46 = vpop.f32.mrb[4].mxu1 }
 0x101   :  { %308 = vst.msk [vmem:[%s538_s4] sm:$0xf] %vm307_vm1, %v356_v41  ;;  %v357_v47 = vpack.c.bf16 %v262_v42, %v262_v42  ;;  %314 = vst.msk [vmem:[%s538_s4 + $0x18] sm:$0xf] %vm307_vm1, %v362_v43  ;;  %v238_v48 = vmul.f32 %v345_v21, %v199_v45  ;;  %v201_v49 = vpop.f32.mrb[5].mxu0  ;;  %v363_v50 = vpack.c.bf16 %v268_v44, %v268_v44  ;;  %v225_v52 = vpop.f32.mrb[5].mxu1 }
 0x102   :  { %v244_v51 = vmul.f32 %v345_v21, %v223_v46  ;;  %v202_v53 = vpop.f32.mrb[6].mxu0  ;;  %v226_v54 = vpop.f32.mrb[6].mxu1 }
 0x103   :  { %309 = vst.msk [vmem:[%s538_s4 + $0x4] sm:$0xf] %vm307_vm1, %v357_v47  ;;  %v254_v55 = vadd.f32 %v346_v23, %v238_v48  ;;  %315 = vst.msk [vmem:[%s538_s4 + $0x1c] sm:$0xf] %vm307_vm1, %v363_v50  ;;  %v239_v56 = vmul.f32 %v345_v21, %v202_v53  ;;  %v204_v57 = vpop.f32.mrb[7].mxu0  ;;  %v227_v59 = vpop.f32.mrb[7].mxu1 }
 0x104   :  { %v260_v58 = vadd.f32 %v346_v23, %v244_v51 }
 0x105   :  { %v263_v60 = vmax.f32 %v254_v55, 0.0  ;;  %v255_v61 = vadd.f32 %v346_v23, %v239_v56 }
 0x106   :  { %v269_v62 = vmax.f32 %v260_v58, 0.0 }
 0x107   :  { %v358_v63 = vpack.c.bf16 %v263_v60, %v263_v60  ;;  %v264_v0 = vmax.f32 %v255_v61, 0.0 }
 0x108   :  { %v364_v1 = vpack.c.bf16 %v269_v62, %v269_v62  ;;  %v207_v2 = vpop.f32.mrb[8].mxu0 }
 0x109   :  { %310 = vst.msk [vmem:[%s538_s4 + $0x8] sm:$0xf] %vm307_vm1, %v358_v63  ;;  %v359_v3 = vpack.c.bf16 %v264_v0, %v264_v0  ;;  %v240_v4 = vmul.f32 %v345_v21, %v207_v2  ;;  %v209_v5 = vpop.f32.mrb[9].mxu0 }
 0x10a   :  { %316 = vst.msk [vmem:[%s538_s4 + $0x20] sm:$0xf] %vm307_vm1, %v364_v1  ;;  %v210_v6 = vpop.f32.mrb[10].mxu0 }
 0x10b   :  { %311 = vst.msk [vmem:[%s538_s4 + $0xc] sm:$0xf] %vm307_vm1, %v359_v3  ;;  %v256_v7 = vadd.f32 %v346_v23, %v240_v4  ;;  %v241_v8 = vmul.f32 %v345_v21, %v210_v6  ;;  %v212_v9 = vpop.f32.mrb[11].mxu0 }
 0x10d   :  { %v265_v10 = vmax.f32 %v256_v7, 0.0  ;;  %v257_v11 = vadd.f32 %v346_v23, %v241_v8 }
 0x10f   :  { %v360_v12 = vpack.c.bf16 %v265_v10, %v265_v10  ;;  %v266_v13 = vmax.f32 %v257_v11, 0.0 }
 0x111   :  { %312 = vst.msk [vmem:[%s538_s4 + $0x10] sm:$0xf] %vm307_vm1, %v360_v12  ;;  %v361_v14 = vpack.c.bf16 %v266_v13, %v266_v13 }
 0x113   :  { %313 = vst.msk [vmem:[%s538_s4 + $0x14] sm:$0xf] %vm307_vm1, %v361_v14 }

// kernel: forward.7
= control target key start
LH: loop header
LB: loop body
LE: loop exit
PB: predicated region body
PF: predicated region fallthrough
CT: control target
= control target key end

     0   :  { %v1066_v1 = vmov 0.0   ;;  %vm1067_vm0 = vmmov 0   ;;  %vm57_vm1 = vcmask 261120   ;;  %s1293_s0 = inlined_call_operand.vmem [shape: bf16[3,3,8,32], index: 0, kind: input, shape index: {}]   ;;  %s1294_s1 = inlined_call_operand.vmem [shape: bf16[9,32,64], index: 1, kind: input, shape index: {}]   ;;  %s1295_s2 = inlined_call_operand.vmem [shape: f32[1,64], index: 2, kind: input, shape index: {}]   ;;  %s1296_s3 = inlined_call_operand.vmem [shape: f32[1,64], index: 3, kind: input, shape index: {}]   ;;  %s1297_s4 = inlined_call_operand.vmem [shape: bf16[1,64,32], index: 4, kind: input, shape index: {}]   ;;  %s1298_s5 = inlined_call_operand.vmem [shape: f32[1,32], index: 5, kind: input, shape index: {}]   ;;  %s1299_s6 = inlined_call_operand.vmem [shape: bf16[32,16], index: 6, kind: input, shape index: {}]   ;;  %s1300_s7 = inlined_call_operand.vmem [shape: f32[1,16], index: 7, kind: input, shape index: {}]   ;;  %s1301_s8 = inlined_call_operand.hbm [shape: f32[8,16], index: 8, kind: output, shape index: {}]  }
   0x1   :  { %v1018_v0 = vld [vmem:[%s1294_s1 + $0x30] sm:$0xff]   ;;  %918 = vmatprep.subr.bf16.mxu0 %v1066_v1  ;;  %894 = vmatprep.subr.bf16.mxu1 %v1066_v1  ;;  %v1019_v2 = vld [vmem:[%s1294_s1 + $0x38] sm:$0xff]   ;;  %v799_v4 = vld [vmem:[%s1293_s0 + $0xc] sm:$0xf] }
   0x2   :  { %919 = vmatpush3.bf16.msra.mxu0 %v1018_v0  ;;  %922 = vmatprep.mubr.msk.bf16.mxu0 %vm1067_vm0, %v1066_v1  ;;  %v1021_v3 = vld [vmem:[%s1294_s1 + $0x10] sm:$0xff]   ;;  %v1020_v5 = vld [vmem:[%s1294_s1 + $0x40] sm:$0xff]   ;;  %v1022_v6 = vld [vmem:[%s1294_s1 + $0x18] sm:$0xff]  }
   0x3   :  { %920 = vmatprep.subr.bf16.mxu0 %v1066_v1  ;;  %898 = vmatprep.mubr.msk.bf16.mxu1 %vm1067_vm0, %v1066_v1  ;;  %v1023_v7 = vld [vmem:[%s1294_s1 + $0x48] sm:$0xff]   ;;  %v780_v8 = vld [vmem:[%s1293_s0 + $0x4] sm:$0xf]  ;;  %v807_v11 = vld [vmem:[%s1293_s0 + $0x10] sm:$0xf] }
   0x4   :  { %895 = vmatpush3.bf16.msra.mxu1 %v1021_v3  ;;  %v1025_v9 = vld [vmem:[%s1294_s1] sm:$0xff]   ;;  %v1026_v10 = vld [vmem:[%s1294_s1 + $0x8] sm:$0xff]   ;;  %v1024_v12 = vld [vmem:[%s1294_s1 + $0x50] sm:$0xff]  }
   0x5   :  { %896 = vmatprep.subr.bf16.mxu1 %v1066_v1  ;;  %v1027_v13 = vld [vmem:[%s1294_s1 + $0x58] sm:$0xff]   ;;  %v33_v14 = vld [vmem:[%s1293_s0] sm:$0xf] }
   0x6   :  { %921 = vmatpush3.bf16.msra.mxu0 %v1019_v2  ;;  %v1029_v15 = vld [vmem:[%s1294_s1 + $0x20] sm:$0xff]  }
   0x7   :  { %926 = vmatprep.subr.bf16.mxu0 %v1066_v1 }
   0x8   :  { %897 = vmatpush3.bf16.msra.mxu1 %v1022_v6 }
   0x9   :  { %923 = vmatmul.mubr.msk.bf16.vlgmr.msra.gmra.mrb[0].mxu0 %vm57_vm1, %v799_v4  ;;  %902 = vmatprep.subr.bf16.mxu1 %v1066_v1 }
   0xa   :  { %927 = vmatpush3.bf16.msra.mxu0 %v1020_v5  ;;  %930 = vmatprep.mubr.msk.bf16.mxu0 %vm1067_vm0, %v1066_v1 }
   0xb   :  { %928 = vmatprep.subr.bf16.mxu0 %v1066_v1  ;;  %899 = vmatmul.mubr.msk.bf16.vlgmr.msra.gmra.mrb[0].mxu1 %vm57_vm1, %v780_v8 }
   0xc   :  { %903 = vmatpush3.bf16.msra.mxu1 %v1025_v9  ;;  %906 = vmatprep.mubr.msk.bf16.mxu1 %vm1067_vm0, %v1066_v1 }
   0xd   :  { %904 = vmatprep.subr.bf16.mxu1 %v1066_v1 }
   0xe   :  { %929 = vmatpush3.bf16.msra.mxu0 %v1023_v7 }
   0xf   :  { %934 = vmatprep.subr.bf16.mxu0 %v1066_v1 }
  0x10   :  { %905 = vmatpush3.bf16.msra.mxu1 %v1026_v10 }
  0x11   :  { %910 = vmatprep.subr.bf16.mxu1 %v1066_v1 }
  0x15   :  { %931 = vmatmul.mubr.msk.bf16.vlgmr.msra.gmra.mrb[0].mxu0 %vm57_vm1, %v807_v11 }
  0x16   :  { %935 = vmatpush3.bf16.msra.mxu0 %v1024_v12  ;;  %938 = vmatprep.mubr.msk.bf16.mxu0 %vm1067_vm0, %v1066_v1 }
  0x17   :  { %936 = vmatprep.subr.bf16.mxu0 %v1066_v1  ;;  %907 = vmatmul.mubr.msk.bf16.vlgmr.msra.gmra.mrb[0].mxu1 %vm57_vm1, %v33_v14 }
  0x18   :  { %13 = vsyncpa [#allocation3], 0  ;;  %911 = vmatpush3.bf16.msra.mxu1 %v1029_v15  ;;  %v1030_v16 = vld [vmem:[%s1294_s1 + $0x28] sm:$0xff]   ;;  %914 = vmatprep.mubr.msk.bf16.mxu1 %vm1067_vm0, %v1066_v1  ;;  %v815_v17 = vld [vmem:[%s1293_s0 + $0x14] sm:$0xf]  ;;  %vm652_vm2 = vcmask 523264  }
  0x19   :  { %912 = vmatprep.subr.bf16.mxu1 %v1066_v1  ;;  %v1028_v18 = vld [vmem:[%s1294_s1 + $0x60] sm:$0xff]   ;;  %v1031_v19 = vld [vmem:[%s1294_s1 + $0x68] sm:$0xff]   ;;  %v823_v21 = vld [vmem:[%s1293_s0 + $0x18] sm:$0xf]  ;;  %s1068_s30 = smov [#allocation2]   ;;  %vm764_vm3 = vcmask 130048  }
  0x1a   :  { %937 = vmatpush3.bf16.msra.mxu0 %v1027_v13  ;;  %v791_v20 = vld [vmem:[%s1293_s0 + $0x8] sm:$0xf]  ;;  %v1032_v22 = vld [vmem:[%s1294_s1 + $0x70] sm:$0xff]   ;;  %v1033_v23 = vld [vmem:[%s1294_s1 + $0x78] sm:$0xff]  }
  0x1b   :  { %942 = vmatprep.subr.bf16.mxu0 %v1066_v1  ;;  %v831_v24 = vld [vmem:[%s1293_s0 + $0x1c] sm:$0xf]  ;;  %v1034_v25 = vld [vmem:[%s1294_s1 + $0x80] sm:$0xff]   ;;  %v1035_v26 = vld [vmem:[%s1294_s1 + $0x88] sm:$0xff]  }
  0x1c   :  { %913 = vmatpush3.bf16.msra.mxu1 %v1030_v16  ;;  %v839_v27 = vld [vmem:[%s1293_s0 + $0x20] sm:$0xf]  ;;  %v1037_v29 = vld [vmem:[%s1297_s4 + $0x8] sm:$0xff]   ;;  %v1038_v30 = vld [vmem:[%s1297_s4 + $0x10] sm:$0xff]  }
  0x1d   :  { %966 = vmatprep.subr.bf16.mxu1 %v1066_v1  ;;  %v1036_v28 = vld [vmem:[%s1297_s4] sm:$0xff]   ;;  %v1039_v31 = vld [vmem:[%s1297_s4 + $0x18] sm:$0xff]   ;;  %v1041_v48 = vld [vmem:[%s1299_s6 + $0x8] sm:$0xff]  }
  0x1e   :  { %v847_v36 = vld [vmem:[%s1295_s2] ss:$0 sm:$0xff] }
  0x1f   :  { %v848_v40 = vld [vmem:[%s1296_s3] ss:$0 sm:$0xff] }
  0x20   :  { %v1040_v47 = vld [vmem:[%s1299_s6] sm:$0xff]   ;;  %s772_s6 = sshll.u32 %s1068_s30, 4  ;;  %s773_s6 = int_to_ptr.vmem [resolvable:$true] %s772_s6 }
  0x21   :  { %939 = vmatmul.mubr.msk.bf16.vlgmr.msra.gmra.mrb[0].mxu0 %vm57_vm1, %v815_v17  ;;  %v849_v49 = vld [vmem:[%s1298_s5] ss:$0 sm:$0xff]  ;;  %s1042_s5 = scalar_lea.vmem %s773_s6, 128  ;;  %p1047_p1 = scmp.lt.s32.totalorder %s773_s6, %s773_s6 }
  0x22   :  { %943 = vmatpush3.bf16.msra.mxu0 %v1028_v18  ;;  %946 = vmatprep.mubr.msk.bf16.mxu0 %vm1067_vm0, %v1066_v1  ;;  %v855_v57 = vld [vmem:[%s1300_s7] ss:$0 sm:$0xff]  ;;  %p1043_p0 = scmp.ne.s32.totalorder %s773_s6, %s1042_s5  ;;  %p1048_p2 = scmp.lt.s32.totalorder %s1042_s5, %s1042_s5 }
  0x23   :  { %944 = vmatprep.subr.bf16.mxu0 %v1066_v1  ;;  %915 = vmatmul.mubr.msk.bf16.vlgmr.msra.gmra.mrb[0].mxu1 %vm57_vm1, %v791_v20 }
  0x24   :  { %974 = vmatprep.mubr.msk.bf16.mxu1 %vm1067_vm0, %v1066_v1  ;;  %967 = vmatpush3.bf16.msra.mxu1 %v1036_v28  ;;  %p1049_p3 = por %p1048_p2, %p1047_p1 }
  0x25   :  { %968 = vmatprep.subr.bf16.mxu1 %v1066_v1 }
  0x26   :  { %945 = vmatpush3.bf16.msra.mxu0 %v1031_v19  ;;  %p1050_p4 = pnand %p1049_p3, %p1043_p0 }
  0x27   :  { %950 = vmatprep.subr.bf16.mxu0 %v1066_v1 }
  0x28   :  { %969 = vmatpush3.bf16.msra.mxu1 %v1037_v29 }
  0x29   :  { %970 = vmatprep.subr.bf16.mxu1 %v1066_v1 }
  0x2c   :  { %971 = vmatpush3.bf16.msra.mxu1 %v1038_v30 }
  0x2d   :  { %947 = vmatmul.mubr.msk.bf16.vlgmr.msra.gmra.mrb[0].mxu0 %vm57_vm1, %v823_v21  ;;  %972 = vmatprep.subr.bf16.mxu1 %v1066_v1 }
  0x2e   :  { %951 = vmatpush3.bf16.msra.mxu0 %v1032_v22  ;;  %954 = vmatprep.mubr.msk.bf16.mxu0 %vm1067_vm0, %v1066_v1 }
  0x2f   :  { %952 = vmatprep.subr.bf16.mxu0 %v1066_v1 }
  0x30   :  { %973 = vmatpush3.bf16.msra.mxu1 %v1039_v31 }
  0x31   :  { %978 = vmatprep.subr.bf16.mxu1 %v1066_v1 }
  0x32   :  { %953 = vmatpush3.bf16.msra.mxu0 %v1033_v23 }
  0x33   :  { %958 = vmatprep.subr.bf16.mxu0 %v1066_v1 }
  0x39   :  { %955 = vmatmul.mubr.msk.bf16.vlgmr.msra.gmra.mrb[0].mxu0 %vm57_vm1, %v831_v24 }
  0x3a   :  { %959 = vmatpush3.bf16.msra.mxu0 %v1034_v25  ;;  %962 = vmatprep.mubr.msk.bf16.mxu0 %vm1067_vm0, %v1066_v1 }
  0x3b   :  { %960 = vmatprep.subr.bf16.mxu0 %v1066_v1 }
  0x3e   :  { %961 = vmatpush3.bf16.msra.mxu0 %v1035_v26 }
  0x45   :  { %963 = vmatmul.mubr.msk.bf16.vlgmr.msra.gmra.mrb[0].mxu0 %vm57_vm1, %v839_v27 }
  0xf6   :  { %v212_v32 = vpop.f32.mrb[0].mxu1 }
  0xf7   :  { %v916_v33 = vpop.f32.mrb[1].mxu1 }
  0xf8   :  { %v215_v34 = vpop.f32.mrb[2].mxu1 }
  0xf9   :  { %v917_v35 = vpop.f32.mrb[3].mxu1 }
 0x118   :  { %v590_v37 = vpop.f32.mrb[0].mxu0 }
 0x119   :  { %v986_v38 = vadd.f32 %v590_v37, %v212_v32  ;;  %v964_v39 = vpop.f32.mrb[1].mxu0 }
 0x11a   :  { %v593_v41 = vpop.f32.mrb[2].mxu0 }
 0x11b   :  { %v603_v42 = vmul.f32 %v986_v38, %v847_v36  ;;  %v965_v43 = vpop.f32.mrb[3].mxu0 }
 0x11d   :  { %v610_v44 = vadd.f32 %v848_v40, %v603_v42 }
 0x11f   :  { %v611_v45 = vmax.f32 %v610_v44, 0.0 }
 0x121   :  { %v612_v46 = vpack.c.bf16 %v611_v45, %v611_v45 }
 0x123   :  { %975 = vmatmul.mubr.msk.bf16.vlgmr.msra.gmra.mrb[4].mxu1 %vm652_vm2, %v612_v46 }
 0x124   :  { %982 = vmatprep.mubr.msk.bf16.mxu1 %vm1067_vm0, %v1066_v1  ;;  %979 = vmatpush3.bf16.msra.mxu1 %v1040_v47 }
 0x125   :  { %980 = vmatprep.subr.bf16.mxu1 %v1066_v1 }
 0x128   :  { %981 = vmatpush3.bf16.msra.mxu1 %v1041_v48 }
 0x1f6   :  { %v690_v50 = vpop.f32.mrb[4].mxu1 }
 0x1f7   :  { %v691_v51 = vadd.f32 %v849_v49, %v690_v50  ;;  %v976_v52 = vpop.f32.mrb[5].mxu1 }
 0x1f8   :  { %v693_v53 = vpop.f32.mrb[6].mxu1 }
 0x1f9   :  { %v696_v54 = vmax.f32 %v691_v51, 0.0  ;;  %v977_v55 = vpop.f32.mrb[7].mxu1 }
 0x1fb   :  { %v697_v56 = vpack.c.bf16 %v696_v54, %v696_v54 }
 0x1fd   :  { %983 = vmatmul.mubr.msk.bf16.vlgmr.msra.gmra.mrb[8].mxu1 %vm57_vm1, %v697_v56 }
 0x2d0   :  { %v758_v58 = vpop.f32.mrb[8].mxu1 }
 0x2d1   :  { %v759_v59 = vadd.f32 %v855_v57, %v758_v58  ;;  %v984_v60 = vpop.f32.mrb[9].mxu1 }
 0x2d2   :  { %v761_v61 = vpop.f32.mrb[10].mxu1 }
 0x2d3   :  { %v985_v62 = vpop.f32.mrb[11].mxu1  ;;  %765 = vst.msk [vmem:[#allocation2] sm:$0xff] %vm764_vm3, %v759_v59 }
 0x2d4   :  { %1053 = shalt.err (!%p1050_p4)
}
 0x2d5   :  { %s1054_s7 = scalar_lea.hbm %s1301_s8, 128 }
 0x2d6   :  { %p1055_p5 = scmp.ne.s32.totalorder %s1301_s8, %s1054_s7  ;;  %p1058_p6 = scmp.lt.u32.totalorder %s1054_s7, %s1301_s8 }
 0x2d8   :  { %p1060_p7 = pnand %p1058_p6, %p1055_p5 }
 0x2da   :  { %1063 = shalt.err (!%p1060_p7)
}
 0x2db   :  { %775 = dma.vmem_to_hbm [thread:$0]  %s773_s6, 128, %s1301_s8, [#allocation3]  }
 0x2dc   :  { %1064 = dma.done.wait [#allocation3], 128  }
 0x2dd   :  { %1065 = vsyncadd [#allocation3], 4294967168 }
 0x2de   :  { %779 = vsyncpa [#allocation3], 1 }

</bundles_post_ra>
